<compile_context>
chip_gen: v6e
topology: v6e:2x2x1
jax: 0.10.0
libtpu: 0.0.40
codegen_flags: <defaults>
</compile_context>

<pallas_src>
import functools

import jax
import jax.numpy as jnp
from jax.experimental import pallas as pl
from jax.experimental.pallas import tpu as pltpu


# ---------------------------------------------------------------------------
# Kernel 1: global average pool   (N, C, H, W) -> (N, C)
# ---------------------------------------------------------------------------
def _gap_kernel(x_ref, o_ref, *, inv_hw):
    # x_ref: (1, C_TILE, H*W)    o_ref: (1, 1, C_TILE)   (lane-dense output)
    s = jnp.sum(x_ref[...].astype(jnp.float32), axis=-1) * inv_hw   # (1, C_TILE)
    o_ref[...] = s.reshape(o_ref.shape).astype(o_ref.dtype)


def global_avg_pool(x, *, c_tile=512):
    n, c, h, w = x.shape
    hw = h * w
    xr = x.reshape(n, c, hw)                 # contiguous reshape, no data movement
    c_tile = min(c_tile, c)
    assert c % c_tile == 0 and c_tile % 128 == 0, "channel tile must be lane-aligned"

    compiler_params = None
    if jax.default_backend() == "tpu":
        compiler_params = pltpu.CompilerParams(
            dimension_semantics=("parallel", "parallel"))

    out = pl.pallas_call(
        functools.partial(_gap_kernel, inv_hw=1.0 / hw),
        out_shape=jax.ShapeDtypeStruct((n, 1, c), x.dtype),
        grid=(n, c // c_tile),
        in_specs=[pl.BlockSpec((1, c_tile, hw), lambda i, j: (i, j, 0))],
        out_specs=pl.BlockSpec((1, 1, c_tile), lambda i, j: (i, 0, j)),
        compiler_params=compiler_params,
    )(xr)
    return out.reshape(n, c)


# ---------------------------------------------------------------------------
# Kernel 2: fused bottleneck (Linear + BatchNorm1d + LeakyReLU + Dropout)
#           + classifier (Linear)
# ---------------------------------------------------------------------------
def _head_kernel(gf_ref, w1_ref, b1_ref, gamma_ref, beta_ref, mask_ref,
                 w2_ref, b2_ref, cls_ref, *, eps, negative_slope):
    gf = gf_ref[...].astype(jnp.float32)                              # (N, 2048)
    h = jnp.dot(gf, w1_ref[...], preferred_element_type=jnp.float32)  # MXU
    h = h + b1_ref[...]                                               # (N, 512)

    # BatchNorm1d (training mode -> batch statistics, biased variance).
    mean = jnp.mean(h, axis=0, keepdims=True)
    cent = h - mean
    var = jnp.mean(cent * cent, axis=0, keepdims=True)
    hn = cent * jax.lax.rsqrt(var + eps) * gamma_ref[...] + beta_ref[...]

    # LeakyReLU(0.1) + Dropout (mask already contains the 1/(1-p) scaling).
    act = jnp.where(hn >= 0.0, hn, negative_slope * hn)
    feat = act * mask_ref[...]

    cls = jnp.dot(feat, w2_ref[...], preferred_element_type=jnp.float32)
    cls_ref[...] = (cls + b2_ref[...]).astype(cls_ref.dtype)


def bottleneck_classifier(gf, w1, b1, gamma, beta, drop_mask, w2, b2,
                          *, eps=1e-5, negative_slope=0.1):
    n = gf.shape[0]
    num_classes = w2.shape[1]
    kernel = functools.partial(_head_kernel, eps=eps, negative_slope=negative_slope)
    # Whole-operand blocks: gf (N,2048), w1 4 MiB f32, the rest is KiB-scale — all
    # comfortably VMEM-resident on v5e/v6e/v7x.
    return pl.pallas_call(
        kernel,
        out_shape=jax.ShapeDtypeStruct((n, num_classes), jnp.float32),
    )(gf, w1, b1.reshape(1, -1), gamma.reshape(1, -1), beta.reshape(1, -1),
      drop_mask, w2, b2.reshape(1, -1))


# ---------------------------------------------------------------------------
# Full forward (operating on the backbone's output feature map)
# ---------------------------------------------------------------------------
def resnet_builder_forward(feature_map, params=None, *, training=False,
                           dropout_key=None, drop_p=0.5):
    global_feat = global_avg_pool(feature_map)
    if training and params is not None:
        w1, b1, gamma, beta, w2, b2 = params
        n, hidden = global_feat.shape[0], w1.shape[1]
        keep = jax.random.bernoulli(dropout_key, 1.0 - drop_p, (n, hidden))
        drop_mask = keep.astype(jnp.float32) / (1.0 - drop_p)
        cls_score = bottleneck_classifier(global_feat, w1, b1, gamma, beta,
                                          drop_mask, w2, b2)
        return [global_feat], [cls_score]
    return global_feat


if __name__ == "__main__":
    key = jax.random.PRNGKey(0)
    k_x, k_w1, k_w2, k_drop = jax.random.split(key, 4)

    # Small, module-consistent shapes: backbone output is (N, 2048, 7, 7).
    N, C, H, W = 2, 2048, 7, 7
    HIDDEN, NUM_CLASSES, DROP_P = 512, 16, 0.5

    x = jax.random.normal(k_x, (N, C, H, W), dtype=jnp.float32)
    w1 = jax.random.normal(k_w1, (C, HIDDEN), dtype=jnp.float32) * 0.02
    b1 = jnp.zeros((HIDDEN,), jnp.float32)
    gamma = jnp.ones((HIDDEN,), jnp.float32)
    beta = jnp.zeros((HIDDEN,), jnp.float32)
    w2 = jax.random.normal(k_w2, (HIDDEN, NUM_CLASSES), dtype=jnp.float32) * 0.001
    b2 = jnp.zeros((NUM_CLASSES,), jnp.float32)
    params = (w1, b1, gamma, beta, w2, b2)

    # ---- training path: ([global_feat], [cls_score]) ----
    (gfs, clss) = resnet_builder_forward(x, params, training=True,
                                         dropout_key=k_drop, drop_p=DROP_P)
    gf = jax.block_until_ready(gfs[0])
    cls = jax.block_until_ready(clss[0])

    # ---- pure-jnp reference ----
    gf_ref = jnp.mean(x, axis=(2, 3))
    h = gf_ref @ w1 + b1
    mean = h.mean(axis=0, keepdims=True)
    var = ((h - mean) ** 2).mean(axis=0, keepdims=True)
    hn = (h - mean) / jnp.sqrt(var + 1e-5) * gamma + beta
    act = jnp.where(hn >= 0.0, hn, 0.1 * hn)
    keep = jax.random.bernoulli(k_drop, 1.0 - DROP_P, (N, HIDDEN))
    feat = act * (keep.astype(jnp.float32) / (1.0 - DROP_P))
    cls_ref = feat @ w2 + b2

    assert gf.shape == (N, C) and cls.shape == (N, NUM_CLASSES)
    assert bool(jnp.allclose(gf, gf_ref, rtol=1e-4, atol=1e-4)), "global_feat mismatch"
    assert bool(jnp.allclose(cls, cls_ref, rtol=1e-2, atol=1e-2)), "cls_score mismatch"

    # ---- eval path: just the pooled global feature ----
    gf_eval = jax.block_until_ready(resnet_builder_forward(x, training=False))
    assert bool(jnp.allclose(gf_eval, gf_ref, rtol=1e-4, atol=1e-4)), "eval path mismatch"

    print("KERNEL_OK")
</pallas_src>

<mosaic_0001>
module attributes {stable_mosaic.version = 11 : i64} {
  func.func @_gap_kernel(%arg0: i32, %arg1: i32, %arg2: memref<1x512x49xf32, #tpu.memory_space<vmem>>, %arg3: memref<1x1x512xf32, #tpu.memory_space<vmem>>) attributes {dimension_semantics = [#tpu.dimension_semantics<arbitrary>, #tpu.dimension_semantics<arbitrary>], iteration_bounds = array<i64: 2, 4>, scalar_prefetch = 0 : i64, scratch_operands = 0 : i64, tpu.core_type = #tpu.core_type<tc>, window_params = [{transform_indices = @transform_0, window_bounds = array<i64: 1, 512, 49>}, {transform_indices = @transform_1, window_bounds = array<i64: 1, 1, 512>}]} {
    %c0 = arith.constant 0 : index
    %c0_0 = arith.constant 0 : index
    %c0_1 = arith.constant 0 : index
    %0 = vector.load %arg2[%c0, %c0_0, %c0_1] : memref<1x512x49xf32, #tpu.memory_space<vmem>>, vector<1x512x49xf32>
    %cst = arith.constant dense<0.000000e+00> : vector<1x512xf32>
    %1 = vector.multi_reduction <add>, %0, %cst [2] : vector<1x512x49xf32> to vector<1x512xf32>
    %cst_2 = arith.constant 0.0204081628 : f32
    %2 = vector.broadcast %cst_2 : f32 to vector<1x512xf32>
    %3 = arith.mulf %1, %2 : vector<1x512xf32>
    %4 = vector.shape_cast %3 : vector<1x512xf32> to vector<1x1x512xf32>
    %c0_3 = arith.constant 0 : index
    %c0_4 = arith.constant 0 : index
    %c0_5 = arith.constant 0 : index
    %5 = vector.load %arg3[%c0_3, %c0_4, %c0_5] : memref<1x1x512xf32, #tpu.memory_space<vmem>>, vector<1x1x512xf32>
    tpu.vector_store %arg3[%c0_3, %c0_4, %c0_5], %4 {strides = array<i32>} : memref<1x1x512xf32, #tpu.memory_space<vmem>>, vector<1x1x512xf32>,
    return
  }
  func.func @transform_0(%arg0: i32, %arg1: i32) -> (i32, i32, i32) {
    %c0_i32 = arith.constant 0 : i32
    %c0_i32_0 = arith.constant 0 : i32
    return %arg0, %arg1, %c0_i32 : i32, i32, i32
  }
  func.func @transform_1(%arg0: i32, %arg1: i32) -> (i32, i32, i32) {
    %c0_i32 = arith.constant 0 : i32
    %c0_i32_0 = arith.constant 0 : i32
    return %arg0, %c0_i32, %arg1 : i32, i32, i32
  }
}

</mosaic_0001>

<bundles_post_ra>
// kernel: tpu_custom_call.1
= control target key start
LH: loop header
LB: loop body
LE: loop exit
PB: predicated region body
PF: predicated region fallthrough
CT: control target
= control target key end

     0   :  { %6 = vsyncpa [#allocation3], 0  ;;  %s8685_s0 = inlined_call_operand.vmem [shape: f32[2,2048,49], index: 0, kind: input, shape index: {}]   ;;  %s8686_s1 = inlined_call_operand.hbm [shape: f32[2,1,2048], index: 1, kind: output, shape index: {}]  }
   0x1   :  { %8 = vsyncpa [#allocation3 + $0x1], 0  ;;  %s6578_s6 = smov 0   ;;  %s6580_s7 = smov 0  }
   0x2   :  { %s6582_s8 = smov 0   ;;  %s6584_s9 = smov 0  }
   0x3   :  { %s6586_s10 = smov 0   ;;  %s6588_s11 = smov 0  }
   0x4   :  { %s6590_s12 = smov 0   ;;  %s6592_s13 = smov 0  }
   0x5 LB: > { %s6381_s14 = sadd.s32 4294967295, %s6563_s13   ;;  %s6382_s15 = sadd.s32 4294967294, %s6563_s13   ;;  %s6563_s13 = sphi %s6592_s13, %s14_s13   ;;  %s6559_s12 = sphi %s6590_s12, %s8709_s12   ;;  %s6555_s11 = sphi %s6588_s11, %s8708_s11   ;;  %s6551_s10 = sphi %s6586_s10, %s8707_s10   ;;  %s6547_s9 = sphi %s6584_s9, %s8706_s9   ;;  %s6543_s8 = sphi %s6582_s8, %s8705_s8   ;;  %s6539_s7 = sphi %s6580_s7, %s8704_s7   ;;  %s6535_s6 = sphi %s6578_s6, %s8703_s6  }
   0x6   : > { %s23_s16 = sadd.s32 1, %s6555_s11  ;;  %s26_s17 = sadd.s32 1, %s6559_s12 }
   0x7   : > { %p24_p0 = scmp.ge.s32.totalorder %s23_s16, 4  ;;  %p73_p1 = scmp.ne.s32.totalorder %s6543_s8, %s6539_s7 }
   0x8   : > { %p74_p2 = scmp.eq.s32.totalorder %s6381_s14, 7  ;;  %p79_p5 = scmp.ne.s32.totalorder %s6539_s7, %s6535_s6 }
   0x9   : > { %s8711_s16 = smov (%p24_p0, %s23_s16), 0  ;;  %s8713_s17 = smov (!%p24_p0, %s26_s17), %s6559_s12 }
   0xa   : > { %s59_s18 = ssub.s32 %s6555_s11, %s8711_s16  ;;  %p6629_p3 = por %p74_p2, %p73_p1 }
   0xb   : > { %p28_p4 = scmp.ge.s32.totalorder %s8713_s17, 2  ;;  %p80_p6 = scmp.eq.s32.totalorder %s6382_s15, 7 }
   0xc   : > { %p6385_p7 = scmp.ge.s32.totalorder %s6563_s13, 1  ;;  %p111_p9 = scmp.lt.s32.totalorder %s6563_s13, 9 }
   0xd   : > { %s8715_s17 = smov (%p28_p4, %s8713_s17), 0  ;;  %p6638_p8 = por %p80_p6, %p79_p5 }
   0xe   : > { %s58_s21 = ssub.s32 %s6559_s12, %s8715_s17  ;;  %s63_s22 = sadd.s32 1, %s6543_s8 }
   0xf   : > { %s60_s23 = sor.u32 %s59_s18, %s58_s21  ;;  %p112_p10 = pnand %p6385_p7, %p111_p9 }
  0x10   : > { %p61_p11 = scmp.eq.s32.totalorder %s60_s23, 0 }
  0x11   : > { %115 = sbr.rel (%p112_p10) target bundleno = 679 (0x2a7), region = 24 }
  0x12   : > { %s6647_s24 = scalar_select %p61_p11, %s6543_s8, %s63_s22  }
  0x16   : > { %s6387_s25 = sshll.u32 %s6547_s9, 6  ;;  %p136_p12 = scmp.lt.s32.totalorder %s6551_s10, 1  ;;  %vm210_vm0 = vcmask 400384   ;;  %vm5918_vm1 = vcmask 130112   ;;  %vm5925_vm2 = vcmask 195712   ;;  %vm5932_vm3 = vcmask 261312  }
  0x17   : > { %p138_p13 = scmp.lt.s32.totalorder %s6387_s25, 255  ;;  %vm5939_vm4 = vcmask 326912   ;;  %vm5946_vm5 = vcmask 392512   ;;  %vm5953_vm6 = vcmask 458112   ;;  %vm5960_vm7 = vcmask 523712   ;;  %s132_s4 = sand.u32 1, %s6539_s7  }
  0x18   : > { %s137_s26 = scalar_select %p136_p12, %s6551_s10, 1  ;;  %vm5967_vm8 = vcmask 589312   ;;  %vm5974_vm9 = vcmask 654912   ;;  %vm5981_vm10 = vcmask 720512   ;;  %vm5988_vm11 = vcmask 786112  }
  0x19   : > { %s8717_s25 = smov (!%p138_p13, %s6387_s25), 255  ;;  %vm5995_vm12 = vcmask 851712   ;;  %vm6002_vm13 = vcmask 917312   ;;  %vm6009_vm14 = vcmask 982912   ;;  %vm6016_vm15 = vcmask 1048512   ;;  %s6386_s5 = sshll.u32 %s132_s4, 2 }
  0x1a   : > { %s6388_s27 = sshll.u32 %s137_s26, 8  ;;  %s6391_s14 = sshll.u32 %s6547_s9, 2 }
  0x1b   : > { %s141_s28 = sadd.s32 %s6388_s27, %s8717_s25  ;;  %s6392_s15 = sshll.u32 %s6551_s10, 4 }
  0x1c   : > { %s6389_s29 = sshll.u32 %s141_s28, 3  ;;  %s6298_s18 = sadd.s32 %s6392_s15, %s6391_s14 }
  0x1d   : > { %s6655_s3 = scalar_lea.vmem %s8685_s0, %s6389_s29  ;;  %s6393_s9 = sshll.u32 %s6298_s18, 4 }
  0x1e   : > { %v148_v0 = vld [vmem:[%s6655_s3 + $0x10] sm:$0xff]  ;;  %v146_v1 = vld [vmem:[%s6655_s3] sm:$0xff]  ;;  %v149_v2 = vld [vmem:[%s6655_s3 + $0x18] sm:$0xff]  ;;  %s134_s10 = scalar_lea.vmem [#allocation2], %s6386_s5  ;;  %s6300_s25 = scalar_lea.hbm %s8686_s1, %s6393_s9 }
  0x1f   : > { %v217_v3 = vsel %vm210_vm0, %v148_v0, 0.0  ;;  %v211_v4 = vsel %vm210_vm0, %v146_v1, 0.0  ;;  %v147_v5 = vld [vmem:[%s6655_s3 + $0x8] sm:$0xff]  ;;  %v220_v6 = vsel %vm210_vm0, %v149_v2, 0.0  ;;  %v150_v9 = vld [vmem:[%s6655_s3 + $0x20] sm:$0xff]  ;;  %v153_v10 = vld [vmem:[%s6655_s3 + $0x38] sm:$0xff] }
  0x20   : > { %218 = vadd.xlane.f32.xlu1 %v217_v3  ;;  %212 = vadd.xlane.f32.xlu0 %v211_v4  ;;  %v214_v7 = vsel %vm210_vm0, %v147_v5, 0.0  ;;  %v151_v8 = vld [vmem:[%s6655_s3 + $0x28] sm:$0xff]  ;;  %v223_v12 = vsel %vm210_vm0, %v150_v9, 0.0  ;;  %v152_v13 = vld [vmem:[%s6655_s3 + $0x30] sm:$0xff]  ;;  %v154_v15 = vld [vmem:[%s6655_s3 + $0x40] sm:$0xff]  ;;  %v232_v18 = vsel %vm210_vm0, %v153_v10, 0.0 }
  0x21   : > { %v226_v11 = vsel %vm210_vm0, %v151_v8, 0.0  ;;  %v155_v14 = vld [vmem:[%s6655_s3 + $0x48] sm:$0xff]  ;;  %v157_v16 = vld [vmem:[%s6655_s3 + $0x58] sm:$0xff]  ;;  %v156_v17 = vld [vmem:[%s6655_s3 + $0x50] sm:$0xff]  ;;  %v229_v19 = vsel %vm210_vm0, %v152_v13, 0.0  ;;  %v235_v21 = vsel %vm210_vm0, %v154_v15, 0.0 }
  0x22   : > { %v238_v20 = vsel %vm210_vm0, %v155_v14, 0.0  ;;  %v179_v22 = vld [vmem:[%s6655_s3 + $0x108] sm:$0xff]  ;;  %v6681_v23 = vsel %vm210_vm0, %v157_v16, 0.0  ;;  %v6684_v24 = vsel %vm210_vm0, %v156_v17, 0.0  ;;  %v178_v26 = vld [vmem:[%s6655_s3 + $0x100] sm:$0xff]  ;;  %v181_v27 = vld [vmem:[%s6655_s3 + $0x118] sm:$0xff] }
  0x23   : > { %v6687_v25 = vsel %vm210_vm0, %v179_v22, 0.0  ;;  %v180_v28 = vld [vmem:[%s6655_s3 + $0x110] sm:$0xff]  ;;  %v6693_v29 = vsel %vm210_vm0, %v178_v26, 0.0  ;;  %v6696_v30 = vsel %vm210_vm0, %v181_v27, 0.0  ;;  %v183_v32 = vld [vmem:[%s6655_s3 + $0x128] sm:$0xff]  ;;  %v182_v33 = vld [vmem:[%s6655_s3 + $0x120] sm:$0xff] }
  0x24   : > { %221 = vadd.xlane.f32.xlu1 %v220_v6  ;;  %215 = vadd.xlane.f32.xlu0 %v214_v7  ;;  %v6699_v31 = vsel %vm210_vm0, %v180_v28, 0.0  ;;  %v185_v34 = vld [vmem:[%s6655_s3 + $0x138] sm:$0xff]  ;;  %v6705_v35 = vsel %vm210_vm0, %v183_v32, 0.0  ;;  %v6708_v36 = vsel %vm210_vm0, %v182_v33, 0.0  ;;  %v184_v38 = vld [vmem:[%s6655_s3 + $0x130] sm:$0xff]  ;;  %v187_v39 = vld [vmem:[%s6655_s3 + $0x148] sm:$0xff] }
  0x25   : > { %v6711_v37 = vsel %vm210_vm0, %v185_v34, 0.0  ;;  %v186_v40 = vld [vmem:[%s6655_s3 + $0x140] sm:$0xff]  ;;  %v6717_v41 = vsel %vm210_vm0, %v184_v38, 0.0  ;;  %v6720_v42 = vsel %vm210_vm0, %v187_v39, 0.0  ;;  %v189_v44 = vld [vmem:[%s6655_s3 + $0x158] sm:$0xff]  ;;  %v188_v45 = vld [vmem:[%s6655_s3 + $0x150] sm:$0xff] }
  0x26   : > { %v6723_v43 = vsel %vm210_vm0, %v186_v40, 0.0  ;;  %v191_v46 = vld [vmem:[%s6655_s3 + $0x168] sm:$0xff]  ;;  %v6729_v47 = vsel %vm210_vm0, %v189_v44, 0.0  ;;  %v6732_v48 = vsel %vm210_vm0, %v188_v45, 0.0  ;;  %v190_v50 = vld [vmem:[%s6655_s3 + $0x160] sm:$0xff]  ;;  %v193_v51 = vld [vmem:[%s6655_s3 + $0x178] sm:$0xff] }
  0x27   : > { %v6735_v49 = vsel %vm210_vm0, %v191_v46, 0.0  ;;  %v192_v52 = vld [vmem:[%s6655_s3 + $0x170] sm:$0xff]  ;;  %v6741_v53 = vsel %vm210_vm0, %v190_v50, 0.0  ;;  %v6744_v54 = vsel %vm210_vm0, %v193_v51, 0.0  ;;  %v195_v56 = vld [vmem:[%s6655_s3 + $0x188] sm:$0xff]  ;;  %v194_v57 = vld [vmem:[%s6655_s3 + $0x180] sm:$0xff] }
  0x28   : > { %227 = vadd.xlane.f32.xlu1 %v226_v11  ;;  %224 = vadd.xlane.f32.xlu0 %v223_v12  ;;  %v6747_v55 = vsel %vm210_vm0, %v192_v52, 0.0  ;;  %v197_v58 = vld [vmem:[%s6655_s3 + $0x198] sm:$0xff]  ;;  %v6753_v59 = vsel %vm210_vm0, %v195_v56, 0.0  ;;  %v6756_v60 = vsel %vm210_vm0, %v194_v57, 0.0  ;;  %v196_v62 = vld [vmem:[%s6655_s3 + $0x190] sm:$0xff]  ;;  %v199_v63 = vld [vmem:[%s6655_s3 + $0x1a8] sm:$0xff] }
  0x29   : > { %v6759_v61 = vsel %vm210_vm0, %v197_v58, 0.0  ;;  %v198_v0 = vld [vmem:[%s6655_s3 + $0x1a0] sm:$0xff]  ;;  %v159_v1 = vld [vmem:[%s6655_s3 + $0x68] sm:$0xff]  ;;  %v6767_v3 = vsel %vm210_vm0, %v196_v62, 0.0  ;;  %v6770_v4 = vsel %vm210_vm0, %v199_v63, 0.0  ;;  %v201_v6 = vld [vmem:[%s6655_s3 + $0x1b8] sm:$0xff] }
  0x2a   : > { %v158_v2 = vld [vmem:[%s6655_s3 + $0x60] sm:$0xff]  ;;  %v6773_v5 = vsel %vm210_vm0, %v198_v0, 0.0  ;;  %v200_v7 = vld [vmem:[%s6655_s3 + $0x1b0] sm:$0xff]  ;;  %v203_v8 = vld [vmem:[%s6655_s3 + $0x1c8] sm:$0xff]  ;;  %v6779_v9 = vsel %vm210_vm0, %v201_v6, 0.0  ;;  %v250_v32 = vsel %vm210_vm0, %v159_v1, 0.0 }
  0x2b   : > { %v6782_v10 = vsel %vm210_vm0, %v200_v7, 0.0  ;;  %v6785_v11 = vsel %vm210_vm0, %v203_v8, 0.0  ;;  %v202_v12 = vld [vmem:[%s6655_s3 + $0x1c0] sm:$0xff]  ;;  %v204_v13 = vld [vmem:[%s6655_s3 + $0x1d0] sm:$0xff]  ;;  %v205_v14 = vld [vmem:[%s6655_s3 + $0x1d8] sm:$0xff]  ;;  %v247_v33 = vsel %vm210_vm0, %v158_v2, 0.0 }
  0x2c   : > { %233 = vadd.xlane.f32.xlu1 %v232_v18  ;;  %230 = vadd.xlane.f32.xlu0 %v229_v19  ;;  %v6791_v15 = vsel %vm210_vm0, %v202_v12, 0.0  ;;  %v6794_v16 = vsel %vm210_vm0, %v204_v13, 0.0  ;;  %v6797_v17 = vsel %vm210_vm0, %v205_v14, 0.0  ;;  %v206_v18 = vld [vmem:[%s6655_s3 + $0x1e0] sm:$0xff]  ;;  %v207_v19 = vld [vmem:[%s6655_s3 + $0x1e8] sm:$0xff]  ;;  %v209_v27 = vld [vmem:[%s6655_s3 + $0x1f8] sm:$0xff] }
  0x2d   : > { %v6806_v22 = vsel %vm210_vm0, %v207_v19, 0.0  ;;  %v6815_v28 = vsel %vm210_vm0, %v209_v27, 0.0  ;;  %v161_v34 = vld [vmem:[%s6655_s3 + $0x78] sm:$0xff]  ;;  %v160_v38 = vld [vmem:[%s6655_s3 + $0x70] sm:$0xff]  ;;  %v6565_v39 = vmov 0   ;;  %v163_v40 = vld [vmem:[%s6655_s3 + $0x88] sm:$0xff] }
  0x2e   : > { %6469 = vset.pattern.permute.xlu0 %v6565_v39  ;;  %6470 = vset.pattern.permute.xlu1 %v6565_v39  ;;  %v162_v44 = vld [vmem:[%s6655_s3 + $0x80] sm:$0xff]  ;;  %v262_v45 = vsel %vm210_vm0, %v163_v40, 0.0  ;;  %v165_v50 = vld [vmem:[%s6655_s3 + $0x98] sm:$0xff]  ;;  %v164_v51 = vld [vmem:[%s6655_s3 + $0x90] sm:$0xff]  ;;  %s6302_s21 = sshll.u32 %s134_s10, 4  ;;  %s6286_s26 = scalar_lea.sflag [#allocation3], %s132_s4  ;;  %s6303_s21 = int_to_ptr.vmem [resolvable:$true] %s6302_s21 }
  0x2f   : > { %v259_v46 = vsel %vm210_vm0, %v162_v44, 0.0  ;;  %v268_v52 = vsel %vm210_vm0, %v165_v50, 0.0  ;;  %v265_v56 = vsel %vm210_vm0, %v164_v51, 0.0  ;;  %v167_v57 = vld [vmem:[%s6655_s3 + $0xa8] sm:$0xff]  ;;  %v166_v58 = vld [vmem:[%s6655_s3 + $0xa0] sm:$0xff]  ;;  %v169_v0 = vld [vmem:[%s6655_s3 + $0xb8] sm:$0xff] }
  0x30   : > { %239 = vadd.xlane.f32.xlu1 %v238_v20  ;;  %236 = vadd.xlane.f32.xlu0 %v235_v21  ;;  %v208_v20 = vld [vmem:[%s6655_s3 + $0x1f0] sm:$0xff]  ;;  %v6803_v21 = vsel %vm210_vm0, %v206_v18, 0.0  ;;  %v274_v62 = vsel %vm210_vm0, %v167_v57, 0.0  ;;  %v271_v63 = vsel %vm210_vm0, %v166_v58, 0.0  ;;  %v280_v2 = vsel %vm210_vm0, %v169_v0, 0.0  ;;  %v171_v7 = vld [vmem:[%s6655_s3 + $0xc8] sm:$0xff] }
  0x31   : > { %v6809_v26 = vsel %vm210_vm0, %v208_v20, 0.0  ;;  %v168_v1 = vld [vmem:[%s6655_s3 + $0xb0] sm:$0xff]  ;;  %v170_v8 = vld [vmem:[%s6655_s3 + $0xc0] sm:$0xff]  ;;  %v286_v12 = vsel %vm210_vm0, %v171_v7, 0.0  ;;  %v173_v14 = vld [vmem:[%s6655_s3 + $0xd8] sm:$0xff]  ;;  %s6471_s27 = scalar_lea.vmem %s6303_s21, 64 }
  0x32   : > { %v277_v6 = vsel %vm210_vm0, %v168_v1, 0.0  ;;  %v283_v13 = vsel %vm210_vm0, %v170_v8, 0.0  ;;  %v172_v18 = vld [vmem:[%s6655_s3 + $0xd0] sm:$0xff]  ;;  %v292_v19 = vsel %vm210_vm0, %v173_v14, 0.0  ;;  %v175_v27 = vld [vmem:[%s6655_s3 + $0xe8] sm:$0xff]  ;;  %p6472_p0 = scmp.ne.s32.totalorder %s6303_s21, %s6471_s27  ;;  %s6567_s28 = smov [#allocation2]  }
  0x33   : > { %v289_v20 = vsel %vm210_vm0, %v172_v18, 0.0  ;;  %v176_v39 = vld [vmem:[%s6655_s3 + $0xf0] sm:$0xff]  ;;  %s6475_s29 = sshll.u32 %s6567_s28, 4  ;;  %s6476_s29 = int_to_ptr.vmem [resolvable:$false] %s6475_s29 }
  0x34   : > { %245 = vadd.xlane.f32.xlu1 %v6681_v23  ;;  %242 = vadd.xlane.f32.xlu0 %v6684_v24  ;;  %v256_v23 = vsel %vm210_vm0, %v161_v34, 0.0  ;;  %v253_v24 = vsel %vm210_vm0, %v160_v38, 0.0  ;;  %v177_v38 = vld [vmem:[%s6655_s3 + $0xf8] sm:$0xff]  ;;  %p6473_p1 = pnand %p6472_p0, %p6629_p3  ;;  %s6477_s30 = scalar_lea.vmem %s6476_s29, 128 }
  0x35   : > { %p6478_p4 = scmp.lt.s32.totalorder %s6303_s21, %s6476_s29  ;;  %p6479_p5 = scmp.lt.s32.totalorder %s6477_s30, %s6471_s27 }
  0x36   : > { %p6474_p2 = pneg %p6473_p1 }
  0x37   : > { %p6480_p6 = por %p6479_p5, %p6478_p4 }
  0x38   : > { %251 = vadd.xlane.f32.xlu1 %v250_v32  ;;  %248 = vadd.xlane.f32.xlu0 %v247_v33  ;;  %v174_v32 = vld [vmem:[%s6655_s3 + $0xe0] sm:$0xff]  ;;  %v298_v33 = vsel %vm210_vm0, %v175_v27, 0.0 }
  0x39   : > { %v295_v34 = vsel %vm210_vm0, %v174_v32, 0.0  ;;  %p6481_p7 = pnand %p6480_p6, %p6474_p2 }
  0x3c   : > { %257 = vadd.xlane.f32.xlu1 %v256_v23  ;;  %254 = vadd.xlane.f32.xlu0 %v253_v24  ;;  %v304_v23 = vsel %vm210_vm0, %v177_v38, 0.0  ;;  %v301_v24 = vsel %vm210_vm0, %v176_v39, 0.0 }
  0x40   : > { %263 = vadd.xlane.f32.xlu1 %v262_v45  ;;  %260 = vadd.xlane.f32.xlu0 %v259_v46 }
  0x44   : > { %269 = vadd.xlane.f32.xlu1 %v268_v52  ;;  %266 = vadd.xlane.f32.xlu0 %v265_v56 }
  0x48   : > { %275 = vadd.xlane.f32.xlu1 %v274_v62  ;;  %272 = vadd.xlane.f32.xlu0 %v271_v63 }
  0x4c   : > { %281 = vadd.xlane.f32.xlu1 %v280_v2  ;;  %278 = vadd.xlane.f32.xlu0 %v277_v6 }
  0x50   : > { %287 = vadd.xlane.f32.xlu1 %v286_v12  ;;  %284 = vadd.xlane.f32.xlu0 %v283_v13 }
  0x54   : > { %293 = vadd.xlane.f32.xlu1 %v292_v19  ;;  %290 = vadd.xlane.f32.xlu0 %v289_v20 }
  0x58   : > { %299 = vadd.xlane.f32.xlu1 %v298_v33  ;;  %296 = vadd.xlane.f32.xlu0 %v295_v34 }
  0x5c   : > { %305 = vadd.xlane.f32.xlu1 %v304_v23  ;;  %302 = vadd.xlane.f32.xlu0 %v301_v24 }
  0x60   : > { %311 = vadd.xlane.f32.xlu1 %v6687_v25  ;;  %308 = vadd.xlane.f32.xlu0 %v6693_v29  ;;  %v8687_v25 = vlaneseq  ;;  %v6566_v29 = vmov 1966171168  }
  0x64   : > { %317 = vadd.xlane.f32.xlu1 %v6696_v30  ;;  %314 = vadd.xlane.f32.xlu0 %v6699_v31  ;;  %v2584_v30 = vunpack.c.l.s4 %v6566_v29  ;;  %v6888_v31 = vshrl.u32 %v8687_v25, 7 }
  0x68   : > { %323 = vadd.xlane.f32.xlu1 %v6705_v35  ;;  %320 = vadd.xlane.f32.xlu0 %v6708_v36  ;;  %v2585_v35 = vunpack.c.0.s8 %v2584_v30  ;;  %v6891_v36 = vsub.s32 0, %v6888_v31 }
  0x6c   : > { %329 = vadd.xlane.f32.xlu1 %v6711_v37  ;;  %326 = vadd.xlane.f32.xlu0 %v6717_v41  ;;  %v6894_v37 = vsub.s32 1, %v6888_v31  ;;  %v6897_v41 = vsub.s32 2, %v6888_v31 }
  0x70   : > { %335 = vadd.xlane.f32.xlu1 %v6720_v42  ;;  %332 = vadd.xlane.f32.xlu0 %v6723_v43  ;;  %v6900_v42 = vsub.s32 3, %v6888_v31 }
  0x74   : > { %341 = vadd.xlane.f32.xlu1 %v6729_v47  ;;  %338 = vadd.xlane.f32.xlu0 %v6732_v48  ;;  %v6903_v48 = vsub.s32 4, %v6888_v31 }
  0x78   : > { %347 = vadd.xlane.f32.xlu1 %v6735_v49  ;;  %344 = vadd.xlane.f32.xlu0 %v6741_v53  ;;  %v6906_v49 = vsub.s32 5, %v6888_v31  ;;  %v6909_v53 = vsub.s32 6, %v6888_v31 }
  0x7c   : > { %353 = vadd.xlane.f32.xlu1 %v6744_v54  ;;  %350 = vadd.xlane.f32.xlu0 %v6747_v55  ;;  %v6912_v54 = vsub.s32 7, %v6888_v31 }
  0x80   : > { %359 = vadd.xlane.f32.xlu1 %v6753_v59  ;;  %356 = vadd.xlane.f32.xlu0 %v6756_v60  ;;  %v6915_v59 = vsub.s32 %v2585_v35, %v6888_v31 }
  0x82   : > { %8694 = vst [vmem:[#allocation5_spill] sm:$0xff] %v6915_v59 }
  0x84   : > { %365 = vadd.xlane.f32.xlu1 %v6759_v61  ;;  %362 = vadd.xlane.f32.xlu0 %v6767_v3 }
  0x88   : > { %371 = vadd.xlane.f32.xlu1 %v6770_v4  ;;  %368 = vadd.xlane.f32.xlu0 %v6773_v5 }
  0x8c   : > { %377 = vadd.xlane.f32.xlu1 %v6779_v9  ;;  %374 = vadd.xlane.f32.xlu0 %v6782_v10 }
  0x90   : > { %383 = vadd.xlane.f32.xlu1 %v6785_v11  ;;  %380 = vadd.xlane.f32.xlu0 %v6791_v15 }
  0x94   : > { %386 = vadd.xlane.f32.xlu0 %v6794_v16  ;;  %389 = vadd.xlane.f32.xlu1 %v6797_v17 }
  0x98   : > { %392 = vadd.xlane.f32.xlu0 %v6803_v21  ;;  %395 = vadd.xlane.f32.xlu1 %v6806_v22 }
  0x9c   : > { %398 = vadd.xlane.f32.xlu0 %v6809_v26  ;;  %401 = vadd.xlane.f32.xlu1 %v6815_v28 }
  0xa9   : > { %v219_v43 = vpop.xlane.xlu1 %218  ;;  %v213_v47 = vpop.xlane.xlu0 %212 }
  0xaa   : > { %v403_v55 = vmul.f32 0.020408163, %v213_v47  ;;  %v405_v17 = vmul.f32 0.020408163, %v219_v43 }
  0xac   : > { %v534_v60 = vrot.slane %v403_v55, %v6891_v36  ;;  %v538_v61 = vrot.slane %v403_v55, %v6894_v37  ;;  %v542_v3 = vrot.slane %v403_v55, %v6897_v41  ;;  %v546_v4 = vrot.slane %v403_v55, %v6900_v42 }
  0xad   : > { %v222_v5 = vpop.xlane.xlu1 %221  ;;  %v216_v9 = vpop.xlane.xlu0 %215  ;;  %v550_v10 = vrot.slane %v403_v55, %v6903_v48  ;;  %v554_v11 = vrot.slane %v403_v55, %v6906_v49  ;;  %v558_v15 = vrot.slane %v403_v55, %v6909_v53  ;;  %v562_v16 = vrot.slane %v403_v55, %v6912_v54 }
  0xae   : > { %v404_v21 = vmul.f32 0.020408163, %v216_v9  ;;  %v2579_v22 = vcombine.low %v534_v60, %v538_v61  ;;  %v2580_v26 = vcombine.low %v542_v3, %v546_v4  ;;  %v598_v0 = vrot.slane %v405_v17, %v6891_v36 }
  0xaf   : > { %v2581_v28 = vcombine.low %v550_v10, %v554_v11  ;;  %v2582_v40 = vcombine.low %v558_v15, %v562_v16  ;;  %v602_v1 = vrot.slane %v405_v17, %v6894_v37  ;;  %v606_v18 = vrot.slane %v405_v17, %v6897_v41 }
  0xb0   : > { %v2589_v44 = vrot.slane %v2579_v22, %v6915_v59  ;;  %v2596_v45 = vrot.slane %v2580_v26, %v6915_v59  ;;  %v566_v46 = vrot.slane %v404_v21, %v6891_v36  ;;  %v570_v50 = vrot.slane %v404_v21, %v6894_v37 }
  0xb1   : > { %v6929_v51 = vpop.xlane.xlu1 %227  ;;  %v2603_v52 = vrot.slane %v2581_v28, %v6915_v59  ;;  %v2610_v56 = vrot.slane %v2582_v40, %v6915_v59  ;;  %v574_v57 = vrot.slane %v404_v21, %v6897_v41  ;;  %v578_v58 = vrot.slane %v404_v21, %v6900_v42 }
  0xb2   : > { %v2611_v62 = vcombine.low %v2589_v44, %v2596_v45  ;;  %v582_v63 = vrot.slane %v404_v21, %v6903_v48  ;;  %v586_v6 = vrot.slane %v404_v21, %v6906_v49  ;;  %v590_v7 = vrot.slane %v404_v21, %v6909_v53 }
  0xb3   : > { %v2612_v2 = vcombine.low %v2603_v52, %v2610_v56  ;;  %v594_v8 = vrot.slane %v404_v21, %v6912_v54  ;;  %v2628_v13 = vcombine.low %v566_v46, %v570_v50  ;;  %v2629_v14 = vcombine.low %v574_v57, %v578_v58 }
  0xb4   : > { %v2619_v12 = vrot.slane %v2611_v62, %v6915_v59  ;;  %v2630_v27 = vcombine.low %v582_v63, %v586_v6  ;;  %v610_v33 = vrot.slane %v405_v17, %v6900_v42  ;;  %v406_v34 = vmul.f32 0.020408163, %v222_v5 }
  0xb5   : > { %v6943_v19 = vpop.xlane.xlu1 %233  ;;  %v2626_v20 = vrot.slane %v2612_v2, %v6915_v59  ;;  %v2631_v32 = vcombine.low %v590_v7, %v594_v8  ;;  %v2638_v38 = vrot.slane %v2628_v13, %v6915_v59  ;;  %v2645_v39 = vrot.slane %v2629_v14, %v6915_v59  ;;  %v225_v7 = vpop.xlane.xlu0 %224 }
  0xb6   : > { %v2652_v24 = vrot.slane %v2630_v27, %v6915_v59  ;;  %v614_v30 = vrot.slane %v405_v17, %v6903_v48  ;;  %v618_v43 = vrot.slane %v405_v17, %v6906_v49  ;;  %v622_v47 = vrot.slane %v405_v17, %v6909_v53 }
  0xb7   : > { %v2627_v23 = vcombine.low %v2619_v12, %v2626_v20  ;;  %v2659_v29 = vrot.slane %v2631_v32, %v6915_v59  ;;  %v2660_v35 = vcombine.low %v2638_v38, %v2645_v39  ;;  %v626_v55 = vrot.slane %v405_v17, %v6912_v54 }
  0xb8   : > { %v2677_v3 = vcombine.low %v598_v0, %v602_v1  ;;  %v2678_v4 = vcombine.low %v606_v18, %v610_v33  ;;  %v2679_v10 = vcombine.low %v614_v30, %v618_v43  ;;  %v630_v11 = vrot.slane %v406_v34, %v6891_v36 }
  0xb9   : > { %5716 = vperm.xlu0 %6469, %v2627_v23   ;;  %v240_v60 = vpop.xlane.xlu1 %239  ;;  %v2661_v61 = vcombine.low %v2652_v24, %v2659_v29  ;;  %v2668_v9 = vrot.slane %v2660_v35, %v6915_v59  ;;  %v2680_v16 = vcombine.low %v622_v47, %v626_v55  ;;  %v634_v26 = vrot.slane %v406_v34, %v6894_v37 }
  0xba   : > { %v412_v5 = vmul.f32 0.020408163, %v240_v60  ;;  %v2687_v21 = vrot.slane %v2677_v3, %v6915_v59  ;;  %v2694_v22 = vrot.slane %v2678_v4, %v6915_v59  ;;  %v2701_v17 = vrot.slane %v2679_v10, %v6915_v59 }
  0xbb   : > { %v2675_v15 = vrot.slane %v2661_v61, %v6915_v59  ;;  %v638_v28 = vrot.slane %v406_v34, %v6897_v41  ;;  %v642_v40 = vrot.slane %v406_v34, %v6900_v42  ;;  %v2708_v45 = vrot.slane %v2680_v16, %v6915_v59 }
  0xbc   : > { %v2709_v46 = vcombine.low %v2687_v21, %v2694_v22  ;;  %v646_v50 = vrot.slane %v406_v34, %v6903_v48  ;;  %v650_v52 = vrot.slane %v406_v34, %v6906_v49  ;;  %v654_v56 = vrot.slane %v406_v34, %v6909_v53 }
  0xbd   : > { %v2676_v44 = vcombine.low %v2668_v9, %v2675_v15  ;;  %v2710_v57 = vcombine.low %v2701_v17, %v2708_v45  ;;  %v658_v62 = vrot.slane %v406_v34, %v6912_v54  ;;  %v2726_v63 = vcombine.low %v630_v11, %v634_v26  ;;  %v246_v33 = vpop.xlane.xlu1 %245 }
  0xbe   : > { %v2717_v58 = vrot.slane %v2709_v46, %v6915_v59  ;;  %v2727_v0 = vcombine.low %v638_v28, %v642_v40  ;;  %v2728_v1 = vcombine.low %v646_v50, %v650_v52  ;;  %v822_v2 = vrot.slane %v412_v5, %v6891_v36 }
  0xbf   : > { %5719 = vperm.xlu1 %6470, %v2676_v44   ;;  %v826_v6 = vrot.slane %v412_v5, %v6894_v37  ;;  %v2724_v8 = vrot.slane %v2710_v57, %v6915_v59  ;;  %v2729_v12 = vcombine.low %v654_v56, %v658_v62  ;;  %v2736_v13 = vrot.slane %v2726_v63, %v6915_v59  ;;  %v231_v44 = vpop.xlane.xlu0 %230 }
  0xc0   : > { %v830_v14 = vrot.slane %v412_v5, %v6897_v41  ;;  %v6976_v18 = vmul.f32 0.020408163, %v6929_v51  ;;  %v407_v20 = vmul.f32 0.020408163, %v225_v7  ;;  %v2743_v27 = vrot.slane %v2727_v0, %v6915_v59 }
  0xc1   : > { %v2750_v32 = vrot.slane %v2728_v1, %v6915_v59  ;;  %v2725_v34 = vcombine.low %v2717_v58, %v2724_v8  ;;  %v2757_v38 = vrot.slane %v2729_v12, %v6915_v59  ;;  %v834_v39 = vrot.slane %v412_v5, %v6900_v42  ;;  %v252_v22 = vpop.xlane.xlu1 %251 }
  0xc2   : > { %v838_v23 = vrot.slane %v412_v5, %v6903_v48  ;;  %v2758_v24 = vcombine.low %v2736_v13, %v2743_v27  ;;  %v842_v29 = vrot.slane %v412_v5, %v6906_v49  ;;  %v846_v30 = vrot.slane %v412_v5, %v6909_v53 }
  0xc3   : > { %v850_v51 = vrot.slane %v412_v5, %v6912_v54  ;;  %v6987_v35 = vmul.f32 0.020408163, %v6943_v19  ;;  %5722 = vperm.xlu1 %6470, %v2725_v34   ;;  %v2759_v43 = vcombine.low %v2750_v32, %v2757_v38  ;;  %v3020_v47 = vcombine.low %v822_v2, %v826_v6 }
  0xc4   : > { %v3021_v55 = vcombine.low %v830_v14, %v834_v39  ;;  %v414_v60 = vmul.f32 0.020408163, %v246_v33  ;;  %v2766_v61 = vrot.slane %v2758_v24, %v6915_v59  ;;  %v3022_v3 = vcombine.low %v838_v23, %v842_v29 }
  0xc5   : > { %v662_v4 = vrot.slane %v407_v20, %v6891_v36  ;;  %v2773_v9 = vrot.slane %v2759_v43, %v6915_v59  ;;  %v3023_v10 = vcombine.low %v846_v30, %v850_v51  ;;  %v3030_v11 = vrot.slane %v3020_v47, %v6915_v59 }
  0xc6   : > { %v3037_v5 = vrot.slane %v3021_v55, %v6915_v59  ;;  %v3044_v19 = vrot.slane %v3022_v3, %v6915_v59  ;;  %v666_v15 = vrot.slane %v407_v20, %v6894_v37  ;;  %v670_v16 = vrot.slane %v407_v20, %v6897_v41 }
  0xc7   : > { %v674_v21 = vrot.slane %v407_v20, %v6900_v42  ;;  %v2774_v17 = vcombine.low %v2766_v61, %v2773_v9  ;;  %v3051_v26 = vrot.slane %v3023_v10, %v6915_v59  ;;  %v678_v40 = vrot.slane %v407_v20, %v6903_v48 }
  0xc8   : > { %v3052_v28 = vcombine.low %v3030_v11, %v3037_v5  ;;  %v682_v45 = vrot.slane %v407_v20, %v6906_v49  ;;  %v686_v46 = vrot.slane %v407_v20, %v6909_v53  ;;  %v690_v50 = vrot.slane %v407_v20, %v6912_v54  ;;  %v258_v5 = vpop.xlane.xlu1 %257 }
  0xc9   : > { %v2775_v52 = vcombine.low %v662_v4, %v666_v15  ;;  %v7003_v56 = vmul.f32 0.020408163, %v231_v44  ;;  %5725 = vperm.xlu1 %6470, %v2774_v17   ;;  %v3053_v57 = vcombine.low %v3044_v19, %v3051_v26  ;;  %v2776_v62 = vcombine.low %v670_v16, %v674_v21 }
  0xca   : > { %v3060_v58 = vrot.slane %v3052_v28, %v6915_v59  ;;  %v7006_v63 = vmul.f32 0.020408163, %v252_v22  ;;  %v2777_v0 = vcombine.low %v678_v40, %v682_v45  ;;  %v2778_v1 = vcombine.low %v686_v46, %v690_v50  ;;  %v237_v22 = vpop.xlane.xlu0 %236 }
  0xcb   : > { %v2785_v2 = vrot.slane %v2775_v52, %v6915_v59  ;;  %v3067_v6 = vrot.slane %v3053_v57, %v6915_v59  ;;  %v2792_v7 = vrot.slane %v2776_v62, %v6915_v59  ;;  %v886_v8 = vrot.slane %v414_v60, %v6891_v36 }
  0xcc   : > { %v890_v12 = vrot.slane %v414_v60, %v6894_v37  ;;  %v2799_v13 = vrot.slane %v2777_v0, %v6915_v59  ;;  %v2806_v14 = vrot.slane %v2778_v1, %v6915_v59  ;;  %v894_v20 = vrot.slane %v414_v60, %v6897_v41 }
  0xcd   : > { %v898_v27 = vrot.slane %v414_v60, %v6900_v42  ;;  %v3068_v32 = vcombine.low %v3060_v58, %v3067_v6  ;;  %v2807_v33 = vcombine.low %v2785_v2, %v2792_v7  ;;  %v902_v34 = vrot.slane %v414_v60, %v6903_v48 }
  0xce   : > { %v906_v38 = vrot.slane %v414_v60, %v6906_v49  ;;  %v2808_v39 = vcombine.low %v2799_v13, %v2806_v14  ;;  %v910_v23 = vrot.slane %v414_v60, %v6909_v53  ;;  %v914_v24 = vrot.slane %v414_v60, %v6912_v54 }
  0xcf   : > { %v3118_v29 = vcombine.low %v886_v8, %v890_v12  ;;  %5743 = vperm.xlu0 %6469, %v3068_v32   ;;  %v2815_v30 = vrot.slane %v2807_v33, %v6915_v59  ;;  %v3119_v51 = vcombine.low %v894_v20, %v898_v27  ;;  %v694_v47 = vrot.slane %v6976_v18, %v6891_v36 }
  0xd0   : > { %v3120_v43 = vcombine.low %v902_v34, %v906_v38  ;;  %v2822_v55 = vrot.slane %v2808_v39, %v6915_v59  ;;  %v3121_v61 = vcombine.low %v910_v23, %v914_v24  ;;  %v698_v4 = vrot.slane %v6976_v18, %v6894_v37 }
  0xd1   : > { %v3128_v3 = vrot.slane %v3118_v29, %v6915_v59  ;;  %v3135_v9 = vrot.slane %v3119_v51, %v6915_v59  ;;  %v702_v10 = vrot.slane %v6976_v18, %v6897_v41  ;;  %v706_v11 = vrot.slane %v6976_v18, %v6900_v42 }
  0xd2   : > { %v3142_v60 = vrot.slane %v3120_v43, %v6915_v59  ;;  %v2823_v19 = vcombine.low %v2815_v30, %v2822_v55  ;;  %v3149_v15 = vrot.slane %v3121_v61, %v6915_v59  ;;  %v710_v16 = vrot.slane %v6976_v18, %v6903_v48 }
  0xd3   : > { %v714_v21 = vrot.slane %v6976_v18, %v6906_v49  ;;  %v3150_v17 = vcombine.low %v3128_v3, %v3135_v9  ;;  %v718_v26 = vrot.slane %v6976_v18, %v6909_v53  ;;  %v722_v28 = vrot.slane %v6976_v18, %v6912_v54 }
  0xd4   : > { %v2824_v40 = vcombine.low %v694_v47, %v698_v4  ;;  %v7043_v44 = vmul.f32 0.020408163, %v237_v22  ;;  %5728 = vperm.xlu1 %6470, %v2823_v19   ;;  %v3151_v45 = vcombine.low %v3142_v60, %v3149_v15  ;;  %v2825_v46 = vcombine.low %v702_v10, %v706_v11  ;;  %v264_v4 = vpop.xlane.xlu1 %263 }
  0xd5   : > { %v2826_v50 = vcombine.low %v710_v16, %v714_v21  ;;  %v7045_v52 = vmul.f32 0.020408163, %v258_v5  ;;  %v3158_v57 = vrot.slane %v3150_v17, %v6915_v59  ;;  %v2827_v58 = vcombine.low %v718_v26, %v722_v28  ;;  %v243_v5 = vpop.xlane.xlu0 %242 }
  0xd6   : > { %v2834_v62 = vrot.slane %v2824_v40, %v6915_v59  ;;  %v3165_v0 = vrot.slane %v3151_v45, %v6915_v59  ;;  %v2841_v1 = vrot.slane %v2825_v46, %v6915_v59  ;;  %v950_v2 = vrot.slane %v7006_v63, %v6891_v36 }
  0xd7   : > { %v2848_v18 = vrot.slane %v2826_v50, %v6915_v59  ;;  %v2855_v6 = vrot.slane %v2827_v58, %v6915_v59  ;;  %v954_v7 = vrot.slane %v7006_v63, %v6894_v37  ;;  %v958_v8 = vrot.slane %v7006_v63, %v6897_v41 }
  0xd8   : > { %v962_v12 = vrot.slane %v7006_v63, %v6900_v42  ;;  %v3166_v13 = vcombine.low %v3158_v57, %v3165_v0  ;;  %v2856_v14 = vcombine.low %v2834_v62, %v2841_v1  ;;  %v966_v20 = vrot.slane %v7006_v63, %v6903_v48 }
  0xd9   : > { %v970_v27 = vrot.slane %v7006_v63, %v6906_v49  ;;  %v2857_v32 = vcombine.low %v2848_v18, %v2855_v6  ;;  %v974_v33 = vrot.slane %v7006_v63, %v6909_v53  ;;  %v978_v34 = vrot.slane %v7006_v63, %v6912_v54 }
  0xda   : > { %v3216_v38 = vcombine.low %v950_v2, %v954_v7  ;;  %5749 = vperm.xlu0 %6469, %v3166_v13   ;;  %v2864_v39 = vrot.slane %v2856_v14, %v6915_v59  ;;  %v3217_v23 = vcombine.low %v958_v8, %v962_v12  ;;  %v726_v29 = vrot.slane %v7003_v56, %v6891_v36 }
  0xdb   : > { %v3218_v24 = vcombine.low %v966_v20, %v970_v27  ;;  %v2871_v30 = vrot.slane %v2857_v32, %v6915_v59  ;;  %v3219_v51 = vcombine.low %v974_v33, %v978_v34  ;;  %v730_v47 = vrot.slane %v7003_v56, %v6894_v37 }
  0xdc   : > { %v3226_v43 = vrot.slane %v3216_v38, %v6915_v59  ;;  %v3233_v55 = vrot.slane %v3217_v23, %v6915_v59  ;;  %v734_v61 = vrot.slane %v7003_v56, %v6897_v41  ;;  %v738_v3 = vrot.slane %v7003_v56, %v6900_v42 }
  0xdd   : > { %v3240_v63 = vrot.slane %v3218_v24, %v6915_v59  ;;  %v2872_v9 = vcombine.low %v2864_v39, %v2871_v30  ;;  %v3247_v60 = vrot.slane %v3219_v51, %v6915_v59  ;;  %v742_v10 = vrot.slane %v7003_v56, %v6903_v48 }
  0xde   : > { %v746_v11 = vrot.slane %v7003_v56, %v6906_v49  ;;  %v3248_v19 = vcombine.low %v3226_v43, %v3233_v55  ;;  %v750_v15 = vrot.slane %v7003_v56, %v6909_v53  ;;  %v754_v16 = vrot.slane %v7003_v56, %v6912_v54 }
  0xdf   : > { %v2873_v21 = vcombine.low %v726_v29, %v730_v47  ;;  %v7091_v22 = vmul.f32 0.020408163, %v243_v5  ;;  %5731 = vperm.xlu1 %6470, %v2872_v9   ;;  %v3249_v17 = vcombine.low %v3240_v63, %v3247_v60  ;;  %v2874_v26 = vcombine.low %v734_v61, %v738_v3  ;;  %v270_v47 = vpop.xlane.xlu1 %269 }
  0xe0   : > { %v2875_v28 = vcombine.low %v742_v10, %v746_v11  ;;  %v7093_v40 = vmul.f32 0.020408163, %v264_v4  ;;  %v3256_v45 = vrot.slane %v3248_v19, %v6915_v59  ;;  %v2876_v46 = vcombine.low %v750_v15, %v754_v16  ;;  %v249_v4 = vpop.xlane.xlu0 %248 }
  0xe1   : > { %v2883_v50 = vrot.slane %v2873_v21, %v6915_v59  ;;  %v3263_v57 = vrot.slane %v3249_v17, %v6915_v59  ;;  %v2890_v58 = vrot.slane %v2874_v26, %v6915_v59  ;;  %v1014_v62 = vrot.slane %v7045_v52, %v6891_v36 }
  0xe2   : > { %v2897_v56 = vrot.slane %v2875_v28, %v6915_v59  ;;  %v2904_v0 = vrot.slane %v2876_v46, %v6915_v59  ;;  %v1018_v1 = vrot.slane %v7045_v52, %v6894_v37  ;;  %v1022_v18 = vrot.slane %v7045_v52, %v6897_v41 }
  0xe3   : > { %v1026_v2 = vrot.slane %v7045_v52, %v6900_v42  ;;  %v3264_v6 = vcombine.low %v3256_v45, %v3263_v57  ;;  %v2905_v7 = vcombine.low %v2883_v50, %v2890_v58  ;;  %v1030_v8 = vrot.slane %v7045_v52, %v6903_v48 }
  0xe4   : > { %v1034_v12 = vrot.slane %v7045_v52, %v6906_v49  ;;  %v2906_v13 = vcombine.low %v2897_v56, %v2904_v0  ;;  %v1038_v14 = vrot.slane %v7045_v52, %v6909_v53  ;;  %v1042_v20 = vrot.slane %v7045_v52, %v6912_v54 }
  0xe5   : > { %v3314_v27 = vcombine.low %v1014_v62, %v1018_v1  ;;  %5755 = vperm.xlu0 %6469, %v3264_v6   ;;  %v2913_v32 = vrot.slane %v2905_v7, %v6915_v59  ;;  %v3315_v33 = vcombine.low %v1022_v18, %v1026_v2  ;;  %v758_v38 = vrot.slane %v6987_v35, %v6891_v36 }
  0xe6   : > { %v3316_v34 = vcombine.low %v1030_v8, %v1034_v12  ;;  %v2920_v39 = vrot.slane %v2906_v13, %v6915_v59  ;;  %v3317_v23 = vcombine.low %v1038_v14, %v1042_v20  ;;  %v762_v29 = vrot.slane %v6987_v35, %v6894_v37 }
  0xe7   : > { %v3324_v24 = vrot.slane %v3314_v27, %v6915_v59  ;;  %v3331_v30 = vrot.slane %v3315_v33, %v6915_v59  ;;  %v766_v51 = vrot.slane %v6987_v35, %v6897_v41  ;;  %v770_v43 = vrot.slane %v6987_v35, %v6900_v42 }
  0xe8   : > { %v3338_v52 = vrot.slane %v3316_v34, %v6915_v59  ;;  %v2921_v55 = vcombine.low %v2913_v32, %v2920_v39  ;;  %v3345_v63 = vrot.slane %v3317_v23, %v6915_v59  ;;  %v774_v61 = vrot.slane %v6987_v35, %v6903_v48 }
  0xe9   : > { %v778_v3 = vrot.slane %v6987_v35, %v6906_v49  ;;  %v3346_v9 = vcombine.low %v3324_v24, %v3331_v30  ;;  %v782_v60 = vrot.slane %v6987_v35, %v6909_v53  ;;  %v786_v10 = vrot.slane %v6987_v35, %v6912_v54 }
  0xea   : > { %v2922_v11 = vcombine.low %v758_v38, %v762_v29  ;;  %v7139_v5 = vmul.f32 0.020408163, %v249_v4  ;;  %5734 = vperm.xlu1 %6470, %v2921_v55   ;;  %v3347_v19 = vcombine.low %v3338_v52, %v3345_v63  ;;  %v2923_v15 = vcombine.low %v766_v51, %v770_v43  ;;  %v276_v29 = vpop.xlane.xlu1 %275 }
  0xeb   : > { %v2924_v16 = vcombine.low %v774_v61, %v778_v3  ;;  %v7141_v21 = vmul.f32 0.020408163, %v270_v47  ;;  %v3354_v17 = vrot.slane %v3346_v9, %v6915_v59  ;;  %v2925_v26 = vcombine.low %v782_v60, %v786_v10  ;;  %v255_v47 = vpop.xlane.xlu0 %254 }
  0xec   : > { %v2932_v28 = vrot.slane %v2922_v11, %v6915_v59  ;;  %v3361_v45 = vrot.slane %v3347_v19, %v6915_v59  ;;  %v2939_v46 = vrot.slane %v2923_v15, %v6915_v59  ;;  %v1078_v50 = vrot.slane %v7093_v40, %v6891_v36 }
  0xed   : > { %v2946_v35 = vrot.slane %v2924_v16, %v6915_v59  ;;  %v2953_v57 = vrot.slane %v2925_v26, %v6915_v59  ;;  %v1082_v58 = vrot.slane %v7093_v40, %v6894_v37  ;;  %v1086_v56 = vrot.slane %v7093_v40, %v6897_v41 }
  0xee   : > { %v1090_v62 = vrot.slane %v7093_v40, %v6900_v42  ;;  %v3362_v0 = vcombine.low %v3354_v17, %v3361_v45  ;;  %v2954_v1 = vcombine.low %v2932_v28, %v2939_v46  ;;  %v1094_v18 = vrot.slane %v7093_v40, %v6903_v48 }
  0xef   : > { %v1098_v2 = vrot.slane %v7093_v40, %v6906_v49  ;;  %v2955_v6 = vcombine.low %v2946_v35, %v2953_v57  ;;  %v1102_v7 = vrot.slane %v7093_v40, %v6909_v53  ;;  %v1106_v8 = vrot.slane %v7093_v40, %v6912_v54 }
  0xf0   : > { %v3412_v12 = vcombine.low %v1078_v50, %v1082_v58  ;;  %5761 = vperm.xlu0 %6469, %v3362_v0   ;;  %v2962_v13 = vrot.slane %v2954_v1, %v6915_v59  ;;  %v3413_v14 = vcombine.low %v1086_v56, %v1090_v62  ;;  %v790_v27 = vrot.slane %v7043_v44, %v6891_v36 }
  0xf1   : > { %v3414_v20 = vcombine.low %v1094_v18, %v1098_v2  ;;  %v2969_v32 = vrot.slane %v2955_v6, %v6915_v59  ;;  %v3415_v33 = vcombine.low %v1102_v7, %v1106_v8  ;;  %v794_v38 = vrot.slane %v7043_v44, %v6894_v37 }
  0xf2   : > { %v3422_v34 = vrot.slane %v3412_v12, %v6915_v59  ;;  %v3429_v39 = vrot.slane %v3413_v14, %v6915_v59  ;;  %v798_v23 = vrot.slane %v7043_v44, %v6897_v41  ;;  %v802_v24 = vrot.slane %v7043_v44, %v6900_v42 }
  0xf3   : > { %v3436_v40 = vrot.slane %v3414_v20, %v6915_v59  ;;  %v2970_v30 = vcombine.low %v2962_v13, %v2969_v32  ;;  %v3443_v52 = vrot.slane %v3415_v33, %v6915_v59  ;;  %v806_v51 = vrot.slane %v7043_v44, %v6903_v48 }
  0xf4   : > { %v810_v43 = vrot.slane %v7043_v44, %v6906_v49  ;;  %v3444_v55 = vcombine.low %v3422_v34, %v3429_v39  ;;  %v814_v63 = vrot.slane %v7043_v44, %v6909_v53  ;;  %v818_v61 = vrot.slane %v7043_v44, %v6912_v54 }
  0xf5   : > { %v2971_v3 = vcombine.low %v790_v27, %v794_v38  ;;  %v7187_v4 = vmul.f32 0.020408163, %v255_v47  ;;  %5737 = vperm.xlu1 %6470, %v2970_v30   ;;  %v3445_v9 = vcombine.low %v3436_v40, %v3443_v52  ;;  %v2972_v60 = vcombine.low %v798_v23, %v802_v24  ;;  %v282_v38 = vpop.xlane.xlu1 %281 }
  0xf6   : > { %v2973_v10 = vcombine.low %v806_v51, %v810_v43  ;;  %v7189_v11 = vmul.f32 0.020408163, %v276_v29  ;;  %v3452_v19 = vrot.slane %v3444_v55, %v6915_v59  ;;  %v2974_v15 = vcombine.low %v814_v63, %v818_v61  ;;  %v261_v29 = vpop.xlane.xlu0 %260 }
  0xf7   : > { %v2981_v16 = vrot.slane %v2971_v3, %v6915_v59  ;;  %v3459_v17 = vrot.slane %v3445_v9, %v6915_v59  ;;  %v2988_v26 = vrot.slane %v2972_v60, %v6915_v59  ;;  %v1142_v28 = vrot.slane %v7141_v21, %v6891_v36 }
  0xf8   : > { %v2995_v44 = vrot.slane %v2973_v10, %v6915_v59  ;;  %v3002_v45 = vrot.slane %v2974_v15, %v6915_v59  ;;  %v1146_v46 = vrot.slane %v7141_v21, %v6894_v37  ;;  %v1150_v35 = vrot.slane %v7141_v21, %v6897_v41 }
  0xf9   : > { %v1154_v50 = vrot.slane %v7141_v21, %v6900_v42  ;;  %v3460_v57 = vcombine.low %v3452_v19, %v3459_v17  ;;  %v3003_v58 = vcombine.low %v2981_v16, %v2988_v26  ;;  %v1158_v56 = vrot.slane %v7141_v21, %v6903_v48 }
  0xfa   : > { %v1162_v62 = vrot.slane %v7141_v21, %v6906_v49  ;;  %v3004_v0 = vcombine.low %v2995_v44, %v3002_v45  ;;  %v1166_v1 = vrot.slane %v7141_v21, %v6909_v53  ;;  %v1170_v18 = vrot.slane %v7141_v21, %v6912_v54 }
  0xfb   : > { %v3510_v2 = vcombine.low %v1142_v28, %v1146_v46  ;;  %5767 = vperm.xlu0 %6469, %v3460_v57   ;;  %v3011_v6 = vrot.slane %v3003_v58, %v6915_v59  ;;  %v3511_v7 = vcombine.low %v1150_v35, %v1154_v50  ;;  %v854_v12 = vrot.slane %v7091_v22, %v6891_v36 }
  0xfc   : > { %v3512_v8 = vcombine.low %v1158_v56, %v1162_v62  ;;  %v3018_v13 = vrot.slane %v3004_v0, %v6915_v59  ;;  %v3513_v14 = vcombine.low %v1166_v1, %v1170_v18  ;;  %v858_v27 = vrot.slane %v7091_v22, %v6894_v37 }
  0xfd   : > { %v3520_v20 = vrot.slane %v3510_v2, %v6915_v59  ;;  %v3527_v32 = vrot.slane %v3511_v7, %v6915_v59  ;;  %v862_v33 = vrot.slane %v7091_v22, %v6897_v41  ;;  %v866_v34 = vrot.slane %v7091_v22, %v6900_v42 }
  0xfe   : > { %v3534_v21 = vrot.slane %v3512_v8, %v6915_v59  ;;  %v3019_v39 = vcombine.low %v3011_v6, %v3018_v13  ;;  %v3541_v40 = vrot.slane %v3513_v14, %v6915_v59  ;;  %v870_v23 = vrot.slane %v7091_v22, %v6903_v48 }
  0xff   : > { %v874_v24 = vrot.slane %v7091_v22, %v6906_v49  ;;  %v3542_v30 = vcombine.low %v3520_v20, %v3527_v32  ;;  %v878_v52 = vrot.slane %v7091_v22, %v6909_v53  ;;  %v882_v51 = vrot.slane %v7091_v22, %v6912_v54 }
 0x100   : > { %v3069_v43 = vcombine.low %v854_v12, %v858_v27  ;;  %v7235_v47 = vmul.f32 0.020408163, %v261_v29  ;;  %5740 = vperm.xlu1 %6470, %v3019_v39   ;;  %v3543_v55 = vcombine.low %v3534_v21, %v3541_v40  ;;  %v3070_v63 = vcombine.low %v862_v33, %v866_v34  ;;  %v288_v27 = vpop.xlane.xlu1 %287 }
 0x101   : > { %v3071_v61 = vcombine.low %v870_v23, %v874_v24  ;;  %v7237_v3 = vmul.f32 0.020408163, %v282_v38  ;;  %v3550_v9 = vrot.slane %v3542_v30, %v6915_v59  ;;  %v3072_v60 = vcombine.low %v878_v52, %v882_v51  ;;  %v267_v38 = vpop.xlane.xlu0 %266 }
 0x102   : > { %v3079_v10 = vrot.slane %v3069_v43, %v6915_v59  ;;  %v3557_v19 = vrot.slane %v3543_v55, %v6915_v59  ;;  %v3086_v15 = vrot.slane %v3070_v63, %v6915_v59  ;;  %v1206_v16 = vrot.slane %v7189_v11, %v6891_v36 }
 0x103   : > { %v3093_v22 = vrot.slane %v3071_v61, %v6915_v59  ;;  %v3100_v17 = vrot.slane %v3072_v60, %v6915_v59  ;;  %v1210_v26 = vrot.slane %v7189_v11, %v6894_v37  ;;  %v1214_v44 = vrot.slane %v7189_v11, %v6897_v41 }
 0x104   : > { %v1218_v28 = vrot.slane %v7189_v11, %v6900_v42  ;;  %v3558_v45 = vcombine.low %v3550_v9, %v3557_v19  ;;  %v3101_v46 = vcombine.low %v3079_v10, %v3086_v15  ;;  %v1222_v35 = vrot.slane %v7189_v11, %v6903_v48 }
 0x105   : > { %v1226_v50 = vrot.slane %v7189_v11, %v6906_v49  ;;  %v3102_v57 = vcombine.low %v3093_v22, %v3100_v17  ;;  %v1230_v58 = vrot.slane %v7189_v11, %v6909_v53  ;;  %v1234_v56 = vrot.slane %v7189_v11, %v6912_v54 }
 0x106   : > { %v3608_v62 = vcombine.low %v1206_v16, %v1210_v26  ;;  %5773 = vperm.xlu0 %6469, %v3558_v45   ;;  %v3109_v0 = vrot.slane %v3101_v46, %v6915_v59  ;;  %v3609_v1 = vcombine.low %v1214_v44, %v1218_v28  ;;  %v918_v2 = vrot.slane %v7139_v5, %v6891_v36 }
 0x107   : > { %v3610_v18 = vcombine.low %v1222_v35, %v1226_v50  ;;  %v3116_v6 = vrot.slane %v3102_v57, %v6915_v59  ;;  %v3611_v7 = vcombine.low %v1230_v58, %v1234_v56  ;;  %v922_v12 = vrot.slane %v7139_v5, %v6894_v37 }
 0x108   : > { %v3618_v8 = vrot.slane %v3608_v62, %v6915_v59  ;;  %v3625_v13 = vrot.slane %v3609_v1, %v6915_v59  ;;  %v926_v14 = vrot.slane %v7139_v5, %v6897_v41  ;;  %v930_v20 = vrot.slane %v7139_v5, %v6900_v42 }
 0x109   : > { %v3632_v11 = vrot.slane %v3610_v18, %v6915_v59  ;;  %v3117_v32 = vcombine.low %v3109_v0, %v3116_v6  ;;  %v3639_v21 = vrot.slane %v3611_v7, %v6915_v59  ;;  %v934_v33 = vrot.slane %v7139_v5, %v6903_v48 }
 0x10a   : > { %v938_v34 = vrot.slane %v7139_v5, %v6906_v49  ;;  %v3640_v39 = vcombine.low %v3618_v8, %v3625_v13  ;;  %v942_v40 = vrot.slane %v7139_v5, %v6909_v53  ;;  %v946_v23 = vrot.slane %v7139_v5, %v6912_v54 }
 0x10b   : > { %v3167_v24 = vcombine.low %v918_v2, %v922_v12  ;;  %v7283_v29 = vmul.f32 0.020408163, %v267_v38  ;;  %5746 = vperm.xlu1 %6470, %v3117_v32   ;;  %v3641_v30 = vcombine.low %v3632_v11, %v3639_v21  ;;  %v3168_v52 = vcombine.low %v926_v14, %v930_v20  ;;  %v294_v12 = vpop.xlane.xlu1 %293 }
 0x10c   : > { %v3169_v51 = vcombine.low %v934_v33, %v938_v34  ;;  %v7285_v43 = vmul.f32 0.020408163, %v288_v27  ;;  %v3648_v55 = vrot.slane %v3640_v39, %v6915_v59  ;;  %v3170_v63 = vcombine.low %v942_v40, %v946_v23  ;;  %v273_v27 = vpop.xlane.xlu0 %272 }
 0x10d   : > { %v3177_v61 = vrot.slane %v3167_v24, %v6915_v59  ;;  %v3655_v9 = vrot.slane %v3641_v30, %v6915_v59  ;;  %v3184_v60 = vrot.slane %v3168_v52, %v6915_v59  ;;  %v1270_v10 = vrot.slane %v7237_v3, %v6891_v36 }
 0x10e   : > { %v3191_v5 = vrot.slane %v3169_v51, %v6915_v59  ;;  %v3198_v19 = vrot.slane %v3170_v63, %v6915_v59  ;;  %v1274_v15 = vrot.slane %v7237_v3, %v6894_v37  ;;  %v1278_v22 = vrot.slane %v7237_v3, %v6897_v41 }
 0x10f   : > { %v1282_v16 = vrot.slane %v7237_v3, %v6900_v42  ;;  %v3656_v17 = vcombine.low %v3648_v55, %v3655_v9  ;;  %v3199_v26 = vcombine.low %v3177_v61, %v3184_v60  ;;  %v1286_v44 = vrot.slane %v7237_v3, %v6903_v48 }
 0x110   : > { %v1290_v28 = vrot.slane %v7237_v3, %v6906_v49  ;;  %v3200_v45 = vcombine.low %v3191_v5, %v3198_v19  ;;  %v1294_v46 = vrot.slane %v7237_v3, %v6909_v53  ;;  %v1298_v35 = vrot.slane %v7237_v3, %v6912_v54 }
 0x111   : > { %v3706_v50 = vcombine.low %v1270_v10, %v1274_v15  ;;  %5779 = vperm.xlu0 %6469, %v3656_v17   ;;  %v3207_v57 = vrot.slane %v3199_v26, %v6915_v59  ;;  %v3707_v58 = vcombine.low %v1278_v22, %v1282_v16  ;;  %v982_v62 = vrot.slane %v7187_v4, %v6891_v36 }
 0x112   : > { %v3708_v56 = vcombine.low %v1286_v44, %v1290_v28  ;;  %v3214_v0 = vrot.slane %v3200_v45, %v6915_v59  ;;  %v3709_v1 = vcombine.low %v1294_v46, %v1298_v35  ;;  %v986_v2 = vrot.slane %v7187_v4, %v6894_v37 }
 0x113   : > { %v3716_v18 = vrot.slane %v3706_v50, %v6915_v59  ;;  %v3723_v6 = vrot.slane %v3707_v58, %v6915_v59  ;;  %v990_v7 = vrot.slane %v7187_v4, %v6897_v41  ;;  %v994_v8 = vrot.slane %v7187_v4, %v6900_v42 }
 0x114   : > { %v3730_v3 = vrot.slane %v3708_v56, %v6915_v59  ;;  %v3215_v13 = vcombine.low %v3207_v57, %v3214_v0  ;;  %v3737_v11 = vrot.slane %v3709_v1, %v6915_v59  ;;  %v998_v14 = vrot.slane %v7187_v4, %v6903_v48 }
 0x115   : > { %v1002_v20 = vrot.slane %v7187_v4, %v6906_v49  ;;  %v3738_v32 = vcombine.low %v3716_v18, %v3723_v6  ;;  %v1006_v21 = vrot.slane %v7187_v4, %v6909_v53  ;;  %v1010_v33 = vrot.slane %v7187_v4, %v6912_v54 }
 0x116   : > { %v3265_v34 = vcombine.low %v982_v62, %v986_v2  ;;  %v7331_v38 = vmul.f32 0.020408163, %v273_v27  ;;  %5752 = vperm.xlu1 %6470, %v3215_v13   ;;  %v3739_v39 = vcombine.low %v3730_v3, %v3737_v11  ;;  %v3266_v40 = vcombine.low %v990_v7, %v994_v8  ;;  %v300_v2 = vpop.xlane.xlu1 %299 }
 0x117   : > { %v3267_v23 = vcombine.low %v998_v14, %v1002_v20  ;;  %v7333_v24 = vmul.f32 0.020408163, %v294_v12  ;;  %v3746_v30 = vrot.slane %v3738_v32, %v6915_v59  ;;  %v3268_v52 = vcombine.low %v1006_v21, %v1010_v33  ;;  %v279_v12 = vpop.xlane.xlu0 %278 }
 0x118   : > { %v3275_v51 = vrot.slane %v3265_v34, %v6915_v59  ;;  %v3753_v55 = vrot.slane %v3739_v39, %v6915_v59  ;;  %v3282_v63 = vrot.slane %v3266_v40, %v6915_v59  ;;  %v1334_v61 = vrot.slane %v7285_v43, %v6891_v36 }
 0x119   : > { %v3289_v4 = vrot.slane %v3267_v23, %v6915_v59  ;;  %v3296_v9 = vrot.slane %v3268_v52, %v6915_v59  ;;  %v1338_v60 = vrot.slane %v7285_v43, %v6894_v37  ;;  %v1342_v5 = vrot.slane %v7285_v43, %v6897_v41 }
 0x11a   : > { %v1346_v10 = vrot.slane %v7285_v43, %v6900_v42  ;;  %v3754_v19 = vcombine.low %v3746_v30, %v3753_v55  ;;  %v3297_v15 = vcombine.low %v3275_v51, %v3282_v63  ;;  %v1350_v22 = vrot.slane %v7285_v43, %v6903_v48 }
 0x11b   : > { %v1354_v16 = vrot.slane %v7285_v43, %v6906_v49  ;;  %v3298_v17 = vcombine.low %v3289_v4, %v3296_v9  ;;  %v1358_v26 = vrot.slane %v7285_v43, %v6909_v53  ;;  %v1362_v44 = vrot.slane %v7285_v43, %v6912_v54 }
 0x11c   : > { %v3804_v28 = vcombine.low %v1334_v61, %v1338_v60  ;;  %5785 = vperm.xlu0 %6469, %v3754_v19   ;;  %v3305_v45 = vrot.slane %v3297_v15, %v6915_v59  ;;  %v3805_v46 = vcombine.low %v1342_v5, %v1346_v10  ;;  %v1046_v50 = vrot.slane %v7235_v47, %v6891_v36 }
 0x11d   : > { %v3806_v35 = vcombine.low %v1350_v22, %v1354_v16  ;;  %v3312_v57 = vrot.slane %v3298_v17, %v6915_v59  ;;  %v3807_v58 = vcombine.low %v1358_v26, %v1362_v44  ;;  %v1050_v62 = vrot.slane %v7235_v47, %v6894_v37 }
 0x11e   : > { %v3814_v56 = vrot.slane %v3804_v28, %v6915_v59  ;;  %v3821_v0 = vrot.slane %v3805_v46, %v6915_v59  ;;  %v1054_v1 = vrot.slane %v7235_v47, %v6897_v41  ;;  %v1058_v18 = vrot.slane %v7235_v47, %v6900_v42 }
 0x11f   : > { %v3828_v43 = vrot.slane %v3806_v35, %v6915_v59  ;;  %v3313_v6 = vcombine.low %v3305_v45, %v3312_v57  ;;  %v3835_v3 = vrot.slane %v3807_v58, %v6915_v59  ;;  %v1062_v7 = vrot.slane %v7235_v47, %v6903_v48 }
 0x120   : > { %v1066_v8 = vrot.slane %v7235_v47, %v6906_v49  ;;  %v3836_v13 = vcombine.low %v3814_v56, %v3821_v0  ;;  %v1070_v11 = vrot.slane %v7235_v47, %v6909_v53  ;;  %v1074_v14 = vrot.slane %v7235_v47, %v6912_v54 }
 0x121   : > { %v3363_v20 = vcombine.low %v1046_v50, %v1050_v62  ;;  %v7379_v27 = vmul.f32 0.020408163, %v279_v12  ;;  %5758 = vperm.xlu1 %6470, %v3313_v6   ;;  %v3837_v32 = vcombine.low %v3828_v43, %v3835_v3  ;;  %v3364_v21 = vcombine.low %v1054_v1, %v1058_v18  ;;  %v306_v62 = vpop.xlane.xlu1 %305 }
 0x122   : > { %v3365_v33 = vcombine.low %v1062_v7, %v1066_v8  ;;  %v7381_v34 = vmul.f32 0.020408163, %v300_v2  ;;  %v3844_v39 = vrot.slane %v3836_v13, %v6915_v59  ;;  %v3366_v40 = vcombine.low %v1070_v11, %v1074_v14  ;;  %v285_v2 = vpop.xlane.xlu0 %284 }
 0x123   : > { %v3373_v23 = vrot.slane %v3363_v20, %v6915_v59  ;;  %v3851_v30 = vrot.slane %v3837_v32, %v6915_v59  ;;  %v3380_v52 = vrot.slane %v3364_v21, %v6915_v59  ;;  %v1398_v51 = vrot.slane %v7333_v24, %v6891_v36 }
 0x124   : > { %v3387_v47 = vrot.slane %v3365_v33, %v6915_v59  ;;  %v3394_v55 = vrot.slane %v3366_v40, %v6915_v59  ;;  %v1402_v63 = vrot.slane %v7333_v24, %v6894_v37  ;;  %v1406_v4 = vrot.slane %v7333_v24, %v6897_v41 }
 0x125   : > { %v1410_v61 = vrot.slane %v7333_v24, %v6900_v42  ;;  %v3852_v9 = vcombine.low %v3844_v39, %v3851_v30  ;;  %v3395_v60 = vcombine.low %v3373_v23, %v3380_v52  ;;  %v1414_v5 = vrot.slane %v7333_v24, %v6903_v48 }
 0x126   : > { %v1418_v10 = vrot.slane %v7333_v24, %v6906_v49  ;;  %v3396_v19 = vcombine.low %v3387_v47, %v3394_v55  ;;  %v1422_v15 = vrot.slane %v7333_v24, %v6909_v53  ;;  %v1426_v22 = vrot.slane %v7333_v24, %v6912_v54 }
 0x127   : > { %v3902_v16 = vcombine.low %v1398_v51, %v1402_v63  ;;  %5791 = vperm.xlu0 %6469, %v3852_v9   ;;  %v3403_v17 = vrot.slane %v3395_v60, %v6915_v59  ;;  %v3903_v26 = vcombine.low %v1406_v4, %v1410_v61  ;;  %v1110_v28 = vrot.slane %v7283_v29, %v6891_v36 }
 0x128   : > { %v3904_v44 = vcombine.low %v1414_v5, %v1418_v10  ;;  %v3410_v45 = vrot.slane %v3396_v19, %v6915_v59  ;;  %v3905_v46 = vcombine.low %v1422_v15, %v1426_v22  ;;  %v1114_v50 = vrot.slane %v7283_v29, %v6894_v37 }
 0x129   : > { %v3912_v35 = vrot.slane %v3902_v16, %v6915_v59  ;;  %v3919_v57 = vrot.slane %v3903_v26, %v6915_v59  ;;  %v1118_v58 = vrot.slane %v7283_v29, %v6897_v41  ;;  %v1122_v56 = vrot.slane %v7283_v29, %v6900_v42 }
 0x12a   : > { %v3926_v24 = vrot.slane %v3904_v44, %v6915_v59  ;;  %v3411_v0 = vcombine.low %v3403_v17, %v3410_v45  ;;  %v3933_v43 = vrot.slane %v3905_v46, %v6915_v59  ;;  %v1126_v1 = vrot.slane %v7283_v29, %v6903_v48 }
 0x12b   : > { %v1130_v18 = vrot.slane %v7283_v29, %v6906_v49  ;;  %v3934_v6 = vcombine.low %v3912_v35, %v3919_v57  ;;  %v1134_v3 = vrot.slane %v7283_v29, %v6909_v53  ;;  %v1138_v7 = vrot.slane %v7283_v29, %v6912_v54 }
 0x12c   : > { %v3461_v8 = vcombine.low %v1110_v28, %v1114_v50  ;;  %v7427_v12 = vmul.f32 0.020408163, %v285_v2  ;;  %5764 = vperm.xlu1 %6470, %v3411_v0   ;;  %v3935_v13 = vcombine.low %v3926_v24, %v3933_v43  ;;  %v3462_v11 = vcombine.low %v1118_v58, %v1122_v56  ;;  %v312_v50 = vpop.xlane.xlu1 %311 }
 0x12d   : > { %v3463_v14 = vcombine.low %v1126_v1, %v1130_v18  ;;  %v7429_v20 = vmul.f32 0.020408163, %v306_v62  ;;  %v3942_v32 = vrot.slane %v3934_v6, %v6915_v59  ;;  %v3464_v21 = vcombine.low %v1134_v3, %v1138_v7  ;;  %v291_v62 = vpop.xlane.xlu0 %290 }
 0x12e   : > { %v3471_v33 = vrot.slane %v3461_v8, %v6915_v59  ;;  %v3949_v39 = vrot.slane %v3935_v13, %v6915_v59  ;;  %v3478_v40 = vrot.slane %v3462_v11, %v6915_v59  ;;  %v1462_v23 = vrot.slane %v7381_v34, %v6891_v36 }
 0x12f   : > { %v3485_v29 = vrot.slane %v3463_v14, %v6915_v59  ;;  %v3492_v30 = vrot.slane %v3464_v21, %v6915_v59  ;;  %v1466_v52 = vrot.slane %v7381_v34, %v6894_v37  ;;  %v1470_v47 = vrot.slane %v7381_v34, %v6897_v41 }
 0x130   : > { %v1474_v51 = vrot.slane %v7381_v34, %v6900_v42  ;;  %v3950_v55 = vcombine.low %v3942_v32, %v3949_v39  ;;  %v3493_v63 = vcombine.low %v3471_v33, %v3478_v40  ;;  %v1478_v4 = vrot.slane %v7381_v34, %v6903_v48 }
 0x131   : > { %v1482_v61 = vrot.slane %v7381_v34, %v6906_v49  ;;  %v3494_v9 = vcombine.low %v3485_v29, %v3492_v30  ;;  %v1486_v60 = vrot.slane %v7381_v34, %v6909_v53  ;;  %v1490_v5 = vrot.slane %v7381_v34, %v6912_v54 }
 0x132   : > { %v4000_v10 = vcombine.low %v1462_v23, %v1466_v52  ;;  %5797 = vperm.xlu0 %6469, %v3950_v55   ;;  %v3501_v19 = vrot.slane %v3493_v63, %v6915_v59  ;;  %v4001_v15 = vcombine.low %v1470_v47, %v1474_v51  ;;  %v1174_v16 = vrot.slane %v7331_v38, %v6891_v36 }
 0x133   : > { %v4002_v22 = vcombine.low %v1478_v4, %v1482_v61  ;;  %v3508_v17 = vrot.slane %v3494_v9, %v6915_v59  ;;  %v4003_v26 = vcombine.low %v1486_v60, %v1490_v5  ;;  %v1178_v28 = vrot.slane %v7331_v38, %v6894_v37 }
 0x134   : > { %v4010_v44 = vrot.slane %v4000_v10, %v6915_v59  ;;  %v4017_v45 = vrot.slane %v4001_v15, %v6915_v59  ;;  %v1182_v46 = vrot.slane %v7331_v38, %v6897_v41  ;;  %v1186_v35 = vrot.slane %v7331_v38, %v6900_v42 }
 0x135   : > { %v4024_v34 = vrot.slane %v4002_v22, %v6915_v59  ;;  %v3509_v57 = vcombine.low %v3501_v19, %v3508_v17  ;;  %v4031_v24 = vrot.slane %v4003_v26, %v6915_v59  ;;  %v1190_v58 = vrot.slane %v7331_v38, %v6903_v48 }
 0x136   : > { %v1194_v56 = vrot.slane %v7331_v38, %v6906_v49  ;;  %v4032_v0 = vcombine.low %v4010_v44, %v4017_v45  ;;  %v1198_v43 = vrot.slane %v7331_v38, %v6909_v53  ;;  %v1202_v1 = vrot.slane %v7331_v38, %v6912_v54 }
 0x137   : > { %v3559_v18 = vcombine.low %v1174_v16, %v1178_v28  ;;  %v7475_v2 = vmul.f32 0.020408163, %v291_v62  ;;  %5770 = vperm.xlu1 %6470, %v3509_v57   ;;  %v4033_v6 = vcombine.low %v4024_v34, %v4031_v24  ;;  %v3560_v3 = vcombine.low %v1182_v46, %v1186_v35  ;;  %v318_v28 = vpop.xlane.xlu1 %317 }
 0x138   : > { %v3561_v7 = vcombine.low %v1190_v58, %v1194_v56  ;;  %v7477_v8 = vmul.f32 0.020408163, %v312_v50  ;;  %v4040_v13 = vrot.slane %v4032_v0, %v6915_v59  ;;  %v3562_v11 = vcombine.low %v1198_v43, %v1202_v1  ;;  %v297_v50 = vpop.xlane.xlu0 %296 }
 0x139   : > { %v3569_v14 = vrot.slane %v3559_v18, %v6915_v59  ;;  %v4047_v32 = vrot.slane %v4033_v6, %v6915_v59  ;;  %v3576_v21 = vrot.slane %v3560_v3, %v6915_v59  ;;  %v1526_v33 = vrot.slane %v7429_v20, %v6891_v36 }
 0x13a   : > { %v3583_v38 = vrot.slane %v3561_v7, %v6915_v59  ;;  %v3590_v39 = vrot.slane %v3562_v11, %v6915_v59  ;;  %v1530_v40 = vrot.slane %v7429_v20, %v6894_v37  ;;  %v1534_v29 = vrot.slane %v7429_v20, %v6897_v41 }
 0x13b   : > { %v1538_v23 = vrot.slane %v7429_v20, %v6900_v42  ;;  %v4048_v30 = vcombine.low %v4040_v13, %v4047_v32  ;;  %v3591_v52 = vcombine.low %v3569_v14, %v3576_v21  ;;  %v1542_v47 = vrot.slane %v7429_v20, %v6903_v48 }
 0x13c   : > { %v1546_v51 = vrot.slane %v7429_v20, %v6906_v49  ;;  %v3592_v55 = vcombine.low %v3583_v38, %v3590_v39  ;;  %v1550_v63 = vrot.slane %v7429_v20, %v6909_v53  ;;  %v1554_v4 = vrot.slane %v7429_v20, %v6912_v54 }
 0x13d   : > { %v4098_v61 = vcombine.low %v1526_v33, %v1530_v40  ;;  %5803 = vperm.xlu0 %6469, %v4048_v30   ;;  %v3599_v9 = vrot.slane %v3591_v52, %v6915_v59  ;;  %v4099_v60 = vcombine.low %v1534_v29, %v1538_v23  ;;  %v1238_v10 = vrot.slane %v7379_v27, %v6891_v36 }
 0x13e   : > { %v4100_v5 = vcombine.low %v1542_v47, %v1546_v51  ;;  %v3606_v19 = vrot.slane %v3592_v55, %v6915_v59  ;;  %v4101_v15 = vcombine.low %v1550_v63, %v1554_v4  ;;  %v1242_v16 = vrot.slane %v7379_v27, %v6894_v37 }
 0x13f   : > { %v4108_v22 = vrot.slane %v4098_v61, %v6915_v59  ;;  %v4115_v17 = vrot.slane %v4099_v60, %v6915_v59  ;;  %v1246_v26 = vrot.slane %v7379_v27, %v6897_v41  ;;  %v1250_v44 = vrot.slane %v7379_v27, %v6900_v42 }
 0x140   : > { %v4122_v20 = vrot.slane %v4100_v5, %v6915_v59  ;;  %v3607_v45 = vcombine.low %v3599_v9, %v3606_v19  ;;  %v4129_v34 = vrot.slane %v4101_v15, %v6915_v59  ;;  %v1254_v46 = vrot.slane %v7379_v27, %v6903_v48 }
 0x141   : > { %v1258_v35 = vrot.slane %v7379_v27, %v6906_v49  ;;  %v4130_v57 = vcombine.low %v4108_v22, %v4115_v17  ;;  %v1262_v24 = vrot.slane %v7379_v27, %v6909_v53  ;;  %v1266_v58 = vrot.slane %v7379_v27, %v6912_v54 }
 0x142   : > { %v3657_v56 = vcombine.low %v1238_v10, %v1242_v16  ;;  %v7523_v62 = vmul.f32 0.020408163, %v297_v50  ;;  %5776 = vperm.xlu1 %6470, %v3607_v45   ;;  %v4131_v0 = vcombine.low %v4122_v20, %v4129_v34  ;;  %v3658_v43 = vcombine.low %v1246_v26, %v1250_v44  ;;  %v324_v16 = vpop.xlane.xlu1 %323 }
 0x143   : > { %v3659_v1 = vcombine.low %v1254_v46, %v1258_v35  ;;  %v7525_v18 = vmul.f32 0.020408163, %v318_v28  ;;  %v4138_v6 = vrot.slane %v4130_v57, %v6915_v59  ;;  %v3660_v3 = vcombine.low %v1262_v24, %v1266_v58  ;;  %v303_v28 = vpop.xlane.xlu0 %302 }
 0x144   : > { %v3667_v7 = vrot.slane %v3657_v56, %v6915_v59  ;;  %v4145_v13 = vrot.slane %v4131_v0, %v6915_v59  ;;  %v3674_v11 = vrot.slane %v3658_v43, %v6915_v59  ;;  %v1590_v14 = vrot.slane %v7477_v8, %v6891_v36 }
 0x145   : > { %v3681_v27 = vrot.slane %v3659_v1, %v6915_v59  ;;  %v3688_v32 = vrot.slane %v3660_v3, %v6915_v59  ;;  %v1594_v21 = vrot.slane %v7477_v8, %v6894_v37  ;;  %v1598_v38 = vrot.slane %v7477_v8, %v6897_v41 }
 0x146   : > { %v1602_v33 = vrot.slane %v7477_v8, %v6900_v42  ;;  %v4146_v39 = vcombine.low %v4138_v6, %v4145_v13  ;;  %v3689_v40 = vcombine.low %v3667_v7, %v3674_v11  ;;  %v1606_v29 = vrot.slane %v7477_v8, %v6903_v48 }
 0x147   : > { %v1610_v23 = vrot.slane %v7477_v8, %v6906_v49  ;;  %v3690_v30 = vcombine.low %v3681_v27, %v3688_v32  ;;  %v1614_v52 = vrot.slane %v7477_v8, %v6909_v53  ;;  %v1618_v47 = vrot.slane %v7477_v8, %v6912_v54 }
 0x148   : > { %v4196_v51 = vcombine.low %v1590_v14, %v1594_v21  ;;  %5809 = vperm.xlu0 %6469, %v4146_v39   ;;  %v3697_v55 = vrot.slane %v3689_v40, %v6915_v59  ;;  %v4197_v63 = vcombine.low %v1598_v38, %v1602_v33  ;;  %v1302_v61 = vrot.slane %v7427_v12, %v6891_v36 }
 0x149   : > { %v4198_v4 = vcombine.low %v1606_v29, %v1610_v23  ;;  %v3704_v9 = vrot.slane %v3690_v30, %v6915_v59  ;;  %v4199_v60 = vcombine.low %v1614_v52, %v1618_v47  ;;  %v1306_v10 = vrot.slane %v7427_v12, %v6894_v37 }
 0x14a   : > { %v4206_v5 = vrot.slane %v4196_v51, %v6915_v59  ;;  %v4213_v19 = vrot.slane %v4197_v63, %v6915_v59  ;;  %v1310_v15 = vrot.slane %v7427_v12, %v6897_v41  ;;  %v1314_v22 = vrot.slane %v7427_v12, %v6900_v42 }
 0x14b   : > { %v4220_v8 = vrot.slane %v4198_v4, %v6915_v59  ;;  %v3705_v17 = vcombine.low %v3697_v55, %v3704_v9  ;;  %v4227_v20 = vrot.slane %v4199_v60, %v6915_v59  ;;  %v1318_v26 = vrot.slane %v7427_v12, %v6903_v48  ;;  %v309_v55 = vpop.xlane.xlu0 %308 }
 0x14c   : > { %v1322_v44 = vrot.slane %v7427_v12, %v6906_v49  ;;  %v4228_v45 = vcombine.low %v4206_v5, %v4213_v19  ;;  %v1326_v34 = vrot.slane %v7427_v12, %v6909_v53  ;;  %v1330_v46 = vrot.slane %v7427_v12, %v6912_v54  ;;  %v330_v19 = vpop.xlane.xlu1 %329 }
 0x14d   : > { %v3755_v35 = vcombine.low %v1302_v61, %v1306_v10  ;;  %v7571_v50 = vmul.f32 0.020408163, %v303_v28  ;;  %5782 = vperm.xlu1 %6470, %v3705_v17   ;;  %v4229_v57 = vcombine.low %v4220_v8, %v4227_v20  ;;  %v3756_v24 = vcombine.low %v1310_v15, %v1314_v22 }
 0x14e   : > { %v3757_v58 = vcombine.low %v1318_v26, %v1322_v44  ;;  %v7573_v56 = vmul.f32 0.020408163, %v324_v16  ;;  %v4236_v0 = vrot.slane %v4228_v45, %v6915_v59  ;;  %v3758_v43 = vcombine.low %v1326_v34, %v1330_v46 }
 0x14f   : > { %v3765_v1 = vrot.slane %v3755_v35, %v6915_v59  ;;  %v4243_v6 = vrot.slane %v4229_v57, %v6915_v59  ;;  %v3772_v3 = vrot.slane %v3756_v24, %v6915_v59  ;;  %v1654_v7 = vrot.slane %v7525_v18, %v6891_v36 }
 0x150   : > { %v3779_v12 = vrot.slane %v3757_v58, %v6915_v59  ;;  %v3786_v13 = vrot.slane %v3758_v43, %v6915_v59  ;;  %v1658_v11 = vrot.slane %v7525_v18, %v6894_v37  ;;  %v1662_v27 = vrot.slane %v7525_v18, %v6897_v41 }
 0x151   : > { %v1666_v14 = vrot.slane %v7525_v18, %v6900_v42  ;;  %v4244_v32 = vcombine.low %v4236_v0, %v4243_v6  ;;  %v3787_v21 = vcombine.low %v3765_v1, %v3772_v3  ;;  %v1670_v38 = vrot.slane %v7525_v18, %v6903_v48  ;;  %v315_v0 = vpop.xlane.xlu0 %314 }
 0x152   : > { %v1674_v33 = vrot.slane %v7525_v18, %v6906_v49  ;;  %v3788_v39 = vcombine.low %v3779_v12, %v3786_v13  ;;  %v1678_v40 = vrot.slane %v7525_v18, %v6909_v53  ;;  %v1682_v29 = vrot.slane %v7525_v18, %v6912_v54 }
 0x153   : > { %v4294_v23 = vcombine.low %v1654_v7, %v1658_v11  ;;  %5815 = vperm.xlu0 %6469, %v4244_v32   ;;  %v3795_v30 = vrot.slane %v3787_v21, %v6915_v59  ;;  %v4295_v52 = vcombine.low %v1662_v27, %v1666_v14  ;;  %v1366_v51 = vrot.slane %v7475_v2, %v6891_v36 }
 0x154   : > { %v4296_v47 = vcombine.low %v1670_v38, %v1674_v33  ;;  %v3802_v63 = vrot.slane %v3788_v39, %v6915_v59  ;;  %v4297_v4 = vcombine.low %v1678_v40, %v1682_v29  ;;  %v1370_v9 = vrot.slane %v7475_v2, %v6894_v37 }
 0x155   : > { %v4304_v61 = vrot.slane %v4294_v23, %v6915_v59  ;;  %v4311_v18 = vrot.slane %v4295_v52, %v6915_v59  ;;  %v1374_v5 = vrot.slane %v7475_v2, %v6897_v41  ;;  %v1378_v10 = vrot.slane %v7475_v2, %v6900_v42 }
 0x156   : > { %v4318_v60 = vrot.slane %v4296_v47, %v6915_v59  ;;  %v3803_v8 = vcombine.low %v3795_v30, %v3802_v63  ;;  %v4325_v15 = vrot.slane %v4297_v4, %v6915_v59  ;;  %v1382_v22 = vrot.slane %v7475_v2, %v6903_v48  ;;  %v7652_v63 = vpop.xlane.xlu0 %320 }
 0x157   : > { %v1386_v16 = vrot.slane %v7475_v2, %v6906_v49  ;;  %v4326_v17 = vcombine.low %v4304_v61, %v4311_v18  ;;  %v1390_v20 = vrot.slane %v7475_v2, %v6909_v53  ;;  %v1394_v26 = vrot.slane %v7475_v2, %v6912_v54  ;;  %v336_v18 = vpop.xlane.xlu1 %335 }
 0x158   : > { %v3853_v44 = vcombine.low %v1366_v51, %v1370_v9  ;;  %v7619_v28 = vmul.f32 0.020408163, %v309_v55  ;;  %5788 = vperm.xlu1 %6470, %v3803_v8   ;;  %v4327_v45 = vcombine.low %v4318_v60, %v4325_v15  ;;  %v3854_v34 = vcombine.low %v1374_v5, %v1378_v10 }
 0x159   : > { %v3855_v46 = vcombine.low %v1382_v22, %v1386_v16  ;;  %v7621_v35 = vmul.f32 0.020408163, %v330_v19  ;;  %v4334_v57 = vrot.slane %v4326_v17, %v6915_v59  ;;  %v3856_v24 = vcombine.low %v1390_v20, %v1394_v26 }
 0x15a   : > { %v3863_v58 = vrot.slane %v3853_v44, %v6915_v59  ;;  %v4341_v43 = vrot.slane %v4327_v45, %v6915_v59  ;;  %v3870_v1 = vrot.slane %v3854_v34, %v6915_v59  ;;  %v1718_v6 = vrot.slane %v7573_v56, %v6891_v36 }
 0x15b   : > { %v3877_v2 = vrot.slane %v3855_v46, %v6915_v59  ;;  %v3884_v3 = vrot.slane %v3856_v24, %v6915_v59  ;;  %v1722_v12 = vrot.slane %v7573_v56, %v6894_v37  ;;  %v1726_v7 = vrot.slane %v7573_v56, %v6897_v41 }
 0x15c   : > { %v1730_v13 = vrot.slane %v7573_v56, %v6900_v42  ;;  %v4342_v11 = vcombine.low %v4334_v57, %v4341_v43  ;;  %v3885_v27 = vcombine.low %v3863_v58, %v3870_v1  ;;  %v1734_v14 = vrot.slane %v7573_v56, %v6903_v48  ;;  %v327_v43 = vpop.xlane.xlu0 %326 }
 0x15d   : > { %v1738_v32 = vrot.slane %v7573_v56, %v6906_v49  ;;  %v3886_v21 = vcombine.low %v3877_v2, %v3884_v3  ;;  %v1742_v38 = vrot.slane %v7573_v56, %v6909_v53  ;;  %v1746_v33 = vrot.slane %v7573_v56, %v6912_v54 }
 0x15e   : > { %v4392_v39 = vcombine.low %v1718_v6, %v1722_v12  ;;  %5821 = vperm.xlu0 %6469, %v4342_v11   ;;  %v3893_v40 = vrot.slane %v3885_v27, %v6915_v59  ;;  %v4393_v29 = vcombine.low %v1726_v7, %v1730_v13  ;;  %v1430_v30 = vrot.slane %v7523_v62, %v6891_v36 }
 0x15f   : > { %v4394_v23 = vcombine.low %v1734_v14, %v1738_v32  ;;  %v3900_v52 = vrot.slane %v3886_v21, %v6915_v59  ;;  %v4395_v47 = vcombine.low %v1742_v38, %v1746_v33  ;;  %v1434_v55 = vrot.slane %v7523_v62, %v6894_v37 }
 0x160   : > { %v4402_v51 = vrot.slane %v4392_v39, %v6915_v59  ;;  %v4409_v56 = vrot.slane %v4393_v29, %v6915_v59  ;;  %v1438_v61 = vrot.slane %v7523_v62, %v6897_v41  ;;  %v1442_v9 = vrot.slane %v7523_v62, %v6900_v42  ;;  %v7698_v29 = vpop.xlane.xlu1 %341 }
 0x161   : > { %v4416_v4 = vrot.slane %v4394_v23, %v6915_v59  ;;  %v3901_v60 = vcombine.low %v3893_v40, %v3900_v52  ;;  %v4423_v5 = vrot.slane %v4395_v47, %v6915_v59  ;;  %v1446_v10 = vrot.slane %v7523_v62, %v6903_v48 }
 0x162   : > { %v1450_v19 = vrot.slane %v7523_v62, %v6906_v49  ;;  %v4424_v8 = vcombine.low %v4402_v51, %v4409_v56  ;;  %v1454_v15 = vrot.slane %v7523_v62, %v6909_v53  ;;  %v1458_v22 = vrot.slane %v7523_v62, %v6912_v54 }
 0x163   : > { %v3951_v16 = vcombine.low %v1430_v30, %v1434_v55  ;;  %v7669_v17 = vmul.f32 0.020408163, %v315_v0  ;;  %5794 = vperm.xlu1 %6470, %v3901_v60   ;;  %v4425_v20 = vcombine.low %v4416_v4, %v4423_v5  ;;  %v3952_v26 = vcombine.low %v1438_v61, %v1442_v9  ;;  %v333_v4 = vpop.xlane.xlu0 %332 }
 0x164   : > { %v3953_v44 = vcombine.low %v1446_v10, %v1450_v19  ;;  %v7671_v45 = vmul.f32 0.020408163, %v336_v18  ;;  %v4432_v34 = vrot.slane %v4424_v8, %v6915_v59  ;;  %v3954_v46 = vcombine.low %v1454_v15, %v1458_v22 }
 0x165   : > { %v3961_v57 = vrot.slane %v3951_v16, %v6915_v59  ;;  %v4439_v24 = vrot.slane %v4425_v20, %v6915_v59  ;;  %v3968_v58 = vrot.slane %v3952_v26, %v6915_v59  ;;  %v1782_v0 = vrot.slane %v7621_v35, %v6891_v36 }
 0x166   : > { %v3975_v62 = vrot.slane %v3953_v44, %v6915_v59  ;;  %v3982_v1 = vrot.slane %v3954_v46, %v6915_v59  ;;  %v1786_v2 = vrot.slane %v7621_v35, %v6894_v37  ;;  %v1790_v6 = vrot.slane %v7621_v35, %v6897_v41 }
 0x167   : > { %v1794_v3 = vrot.slane %v7621_v35, %v6900_v42  ;;  %v4440_v12 = vcombine.low %v4432_v34, %v4439_v24  ;;  %v3983_v7 = vcombine.low %v3961_v57, %v3968_v58  ;;  %v1798_v13 = vrot.slane %v7621_v35, %v6903_v48  ;;  %v7726_v57 = vpop.xlane.xlu1 %347 }
 0x168   : > { %v1802_v11 = vrot.slane %v7621_v35, %v6906_v49  ;;  %v3984_v27 = vcombine.low %v3975_v62, %v3982_v1  ;;  %v1806_v14 = vrot.slane %v7621_v35, %v6909_v53  ;;  %v1810_v32 = vrot.slane %v7621_v35, %v6912_v54 }
 0x169   : > { %v4490_v21 = vcombine.low %v1782_v0, %v1786_v2  ;;  %5827 = vperm.xlu0 %6469, %v4440_v12   ;;  %v3991_v38 = vrot.slane %v3983_v7, %v6915_v59  ;;  %v4491_v33 = vcombine.low %v1790_v6, %v1794_v3  ;;  %v1494_v40 = vrot.slane %v7571_v50, %v6891_v36  ;;  %v339_v2 = vpop.xlane.xlu0 %338 }
 0x16a   : > { %v4492_v39 = vcombine.low %v1798_v13, %v1802_v11  ;;  %v3998_v23 = vrot.slane %v3984_v27, %v6915_v59  ;;  %v4493_v30 = vcombine.low %v1806_v14, %v1810_v32  ;;  %v1498_v47 = vrot.slane %v7571_v50, %v6894_v37 }
 0x16b   : > { %v4500_v52 = vrot.slane %v4490_v21, %v6915_v59  ;;  %v4507_v35 = vrot.slane %v4491_v33, %v6915_v59  ;;  %v1502_v55 = vrot.slane %v7571_v50, %v6897_v41  ;;  %v1506_v56 = vrot.slane %v7571_v50, %v6900_v42 }
 0x16c   : > { %v4514_v51 = vrot.slane %v4492_v39, %v6915_v59  ;;  %v3999_v61 = vcombine.low %v3991_v38, %v3998_v23  ;;  %v4521_v9 = vrot.slane %v4493_v30, %v6915_v59  ;;  %v1510_v18 = vrot.slane %v7571_v50, %v6903_v48 }
 0x16d   : > { %v1514_v60 = vrot.slane %v7571_v50, %v6906_v49  ;;  %v4522_v5 = vcombine.low %v4500_v52, %v4507_v35  ;;  %v1518_v10 = vrot.slane %v7571_v50, %v6909_v53  ;;  %v1522_v19 = vrot.slane %v7571_v50, %v6912_v54  ;;  %v7755_v52 = vpop.xlane.xlu1 %353 }
 0x16e   : > { %v4049_v8 = vcombine.low %v1494_v40, %v1498_v47  ;;  %v7720_v15 = vmul.f32 0.020408163, %v7652_v63  ;;  %5800 = vperm.xlu1 %6470, %v3999_v61   ;;  %v4523_v22 = vcombine.low %v4514_v51, %v4521_v9  ;;  %v4050_v16 = vcombine.low %v1502_v55, %v1506_v56 }
 0x16f   : > { %v4051_v20 = vcombine.low %v1510_v18, %v1514_v60  ;;  %v7722_v26 = vmul.f32 0.020408163, %v327_v43  ;;  %v4530_v44 = vrot.slane %v4522_v5, %v6915_v59  ;;  %v4052_v34 = vcombine.low %v1518_v10, %v1522_v19  ;;  %v7768_v18 = vpop.xlane.xlu0 %344 }
 0x170   : > { %v4059_v46 = vrot.slane %v4049_v8, %v6915_v59  ;;  %v4537_v24 = vrot.slane %v4523_v22, %v6915_v59  ;;  %v4066_v50 = vrot.slane %v4050_v16, %v6915_v59  ;;  %v1846_v58 = vrot.slane %v7671_v45, %v6891_v36 }
 0x171   : > { %v4073_v63 = vrot.slane %v4051_v20, %v6915_v59  ;;  %v4080_v62 = vrot.slane %v4052_v34, %v6915_v59  ;;  %v1850_v0 = vrot.slane %v7671_v45, %v6894_v37  ;;  %v1854_v43 = vrot.slane %v7671_v45, %v6897_v41 }
 0x172   : > { %v1858_v1 = vrot.slane %v7671_v45, %v6900_v42  ;;  %v4538_v6 = vcombine.low %v4530_v44, %v4537_v24  ;;  %v4081_v3 = vcombine.low %v4059_v46, %v4066_v50  ;;  %v1862_v12 = vrot.slane %v7671_v45, %v6903_v48 }
 0x173   : > { %v1866_v7 = vrot.slane %v7671_v45, %v6906_v49  ;;  %v4082_v13 = vcombine.low %v4073_v63, %v4080_v62  ;;  %v1870_v11 = vrot.slane %v7671_v45, %v6909_v53  ;;  %v1874_v27 = vrot.slane %v7671_v45, %v6912_v54  ;;  %v360_v62 = vpop.xlane.xlu1 %359 }
 0x174   : > { %v4588_v14 = vcombine.low %v1846_v58, %v1850_v0  ;;  %5833 = vperm.xlu0 %6469, %v4538_v6   ;;  %v4089_v32 = vrot.slane %v4081_v3, %v6915_v59  ;;  %v4589_v21 = vcombine.low %v1854_v43, %v1858_v1  ;;  %v1558_v33 = vrot.slane %v7619_v28, %v6891_v36 }
 0x175   : > { %v4590_v38 = vcombine.low %v1862_v12, %v1866_v7  ;;  %v4096_v39 = vrot.slane %v4082_v13, %v6915_v59  ;;  %v4591_v40 = vcombine.low %v1870_v11, %v1874_v27  ;;  %v1562_v30 = vrot.slane %v7619_v28, %v6894_v37  ;;  %v7797_v7 = vpop.xlane.xlu0 %350 }
 0x176   : > { %v4598_v23 = vrot.slane %v4588_v14, %v6915_v59  ;;  %v4605_v45 = vrot.slane %v4589_v21, %v6915_v59  ;;  %v1566_v35 = vrot.slane %v7619_v28, %v6897_v41  ;;  %v1570_v51 = vrot.slane %v7619_v28, %v6900_v42 }
 0x177   : > { %v4612_v47 = vrot.slane %v4590_v38, %v6915_v59  ;;  %v4097_v55 = vcombine.low %v4089_v32, %v4096_v39  ;;  %v4619_v56 = vrot.slane %v4591_v40, %v6915_v59  ;;  %v1574_v61 = vrot.slane %v7619_v28, %v6903_v48 }
 0x178   : > { %v1578_v9 = vrot.slane %v7619_v28, %v6906_v49  ;;  %v4620_v60 = vcombine.low %v4598_v23, %v4605_v45  ;;  %v1582_v5 = vrot.slane %v7619_v28, %v6909_v53  ;;  %v1586_v10 = vrot.slane %v7619_v28, %v6912_v54 }
 0x179   : > { %v4147_v19 = vcombine.low %v1558_v33, %v1562_v30  ;;  %v7774_v8 = vmul.f32 0.020408163, %v333_v4  ;;  %5806 = vperm.xlu1 %6470, %v4097_v55   ;;  %v4621_v22 = vcombine.low %v4612_v47, %v4619_v56  ;;  %v4148_v16 = vcombine.low %v1566_v35, %v1570_v51  ;;  %v366_v55 = vpop.xlane.xlu1 %365 }
 0x17a   : > { %v4149_v20 = vcombine.low %v1574_v61, %v1578_v9  ;;  %v7777_v44 = vmul.f32 0.020408163, %v7698_v29  ;;  %v4628_v34 = vrot.slane %v4620_v60, %v6915_v59  ;;  %v4150_v46 = vcombine.low %v1582_v5, %v1586_v10 }
 0x17b   : > { %v4157_v24 = vrot.slane %v4147_v19, %v6915_v59  ;;  %v4635_v50 = vrot.slane %v4621_v22, %v6915_v59  ;;  %v4164_v63 = vrot.slane %v4148_v16, %v6915_v59  ;;  %v1622_v4 = vrot.slane %v7669_v17, %v6891_v36  ;;  %v357_v19 = vpop.xlane.xlu0 %356 }
 0x17c   : > { %v4171_v28 = vrot.slane %v4149_v20, %v6915_v59  ;;  %v4178_v58 = vrot.slane %v4150_v46, %v6915_v59  ;;  %v1626_v29 = vrot.slane %v7669_v17, %v6894_v37  ;;  %v1630_v0 = vrot.slane %v7669_v17, %v6897_v41 }
 0x17d   : > { %v1634_v43 = vrot.slane %v7669_v17, %v6900_v42  ;;  %v4636_v1 = vcombine.low %v4628_v34, %v4635_v50  ;;  %v4179_v6 = vcombine.low %v4157_v24, %v4164_v63  ;;  %v1638_v3 = vrot.slane %v7669_v17, %v6903_v48 }
 0x17e   : > { %v1642_v12 = vrot.slane %v7669_v17, %v6906_v49  ;;  %v4180_v13 = vcombine.low %v4171_v28, %v4178_v58  ;;  %v1646_v11 = vrot.slane %v7669_v17, %v6909_v53  ;;  %v1650_v27 = vrot.slane %v7669_v17, %v6912_v54 }
 0x17f   : > { %v4245_v14 = vcombine.low %v1622_v4, %v1626_v29  ;;  %v7803_v32 = vmul.f32 0.020408163, %v339_v2  ;;  %5839 = vperm.xlu0 %6469, %v4636_v1   ;;  %v4187_v21 = vrot.slane %v4179_v6, %v6915_v59  ;;  %v4246_v38 = vcombine.low %v1630_v0, %v1634_v43 }
 0x180   : > { %v4247_v33 = vcombine.low %v1638_v3, %v1642_v12  ;;  %v4194_v39 = vrot.slane %v4180_v13, %v6915_v59  ;;  %v7807_v40 = vmul.f32 0.020408163, %v360_v62  ;;  %v4248_v23 = vcombine.low %v1646_v11, %v1650_v27  ;;  %v372_v12 = vpop.xlane.xlu1 %371 }
 0x181   : > { %v4255_v30 = vrot.slane %v4245_v14, %v6915_v59  ;;  %v4262_v45 = vrot.slane %v4246_v38, %v6915_v59  ;;  %v1686_v17 = vrot.slane %v7720_v15, %v6891_v36  ;;  %v1690_v2 = vrot.slane %v7720_v15, %v6894_v37  ;;  %v363_v38 = vpop.xlane.xlu0 %362 }
 0x182   : > { %v4269_v47 = vrot.slane %v4247_v33, %v6915_v59  ;;  %v4195_v35 = vcombine.low %v4187_v21, %v4194_v39  ;;  %v4276_v51 = vrot.slane %v4248_v23, %v6915_v59  ;;  %v1694_v56 = vrot.slane %v7720_v15, %v6897_v41 }
 0x183   : > { %v1698_v61 = vrot.slane %v7720_v15, %v6900_v42  ;;  %v4277_v9 = vcombine.low %v4255_v30, %v4262_v45  ;;  %v1702_v60 = vrot.slane %v7720_v15, %v6903_v48  ;;  %v1706_v5 = vrot.slane %v7720_v15, %v6906_v49 }
 0x184   : > { %v1710_v10 = vrot.slane %v7720_v15, %v6909_v53  ;;  %5812 = vperm.xlu1 %6470, %v4195_v35   ;;  %v4278_v22 = vcombine.low %v4269_v47, %v4276_v51  ;;  %v1714_v16 = vrot.slane %v7720_v15, %v6912_v54  ;;  %v4343_v20 = vcombine.low %v1686_v17, %v1690_v2 }
 0x185   : > { %v4344_v34 = vcombine.low %v1694_v56, %v1698_v61  ;;  %v7829_v46 = vmul.f32 0.020408163, %v357_v19  ;;  %v4285_v24 = vrot.slane %v4277_v9, %v6915_v59  ;;  %v7832_v50 = vmul.f32 0.020408163, %v366_v55 }
 0x186   : > { %v4345_v63 = vcombine.low %v1702_v60, %v1706_v5  ;;  %v4292_v28 = vrot.slane %v4278_v22, %v6915_v59  ;;  %v4346_v4 = vcombine.low %v1710_v10, %v1714_v16  ;;  %v4353_v58 = vrot.slane %v4343_v20, %v6915_v59 }
 0x187   : > { %v4360_v62 = vrot.slane %v4344_v34, %v6915_v59  ;;  %v1750_v15 = vrot.slane %v7722_v26, %v6891_v36  ;;  %v1754_v0 = vrot.slane %v7722_v26, %v6894_v37  ;;  %v1758_v43 = vrot.slane %v7722_v26, %v6897_v41 }
 0x188   : > { %v4367_v29 = vrot.slane %v4345_v63, %v6915_v59  ;;  %v4293_v1 = vcombine.low %v4285_v24, %v4292_v28  ;;  %v4374_v6 = vrot.slane %v4346_v4, %v6915_v59  ;;  %v1762_v13 = vrot.slane %v7722_v26, %v6900_v42 }
 0x189   : > { %v4375_v3 = vcombine.low %v4353_v58, %v4360_v62  ;;  %v1766_v11 = vrot.slane %v7722_v26, %v6903_v48  ;;  %v1770_v27 = vrot.slane %v7722_v26, %v6906_v49  ;;  %v1774_v14 = vrot.slane %v7722_v26, %v6909_v53 }
 0x18a   : > { %v1778_v21 = vrot.slane %v7722_v26, %v6912_v54  ;;  %5818 = vperm.xlu1 %6470, %v4293_v1   ;;  %v4376_v33 = vcombine.low %v4367_v29, %v4374_v6  ;;  %v4441_v23 = vcombine.low %v1750_v15, %v1754_v0  ;;  %v4442_v30 = vcombine.low %v1758_v43, %v1762_v13 }
 0x18b   : > { %v4383_v39 = vrot.slane %v4375_v3, %v6915_v59  ;;  %v7856_v45 = vmul.f32 0.020408163, %v363_v38  ;;  %v7858_v47 = vmul.f32 0.020408163, %v372_v12  ;;  %v4443_v17 = vcombine.low %v1766_v11, %v1770_v27  ;;  %v378_v12 = vpop.xlane.xlu1 %377 }
 0x18c   : > { %v4444_v2 = vcombine.low %v1774_v14, %v1778_v21  ;;  %v4390_v35 = vrot.slane %v4376_v33, %v6915_v59  ;;  %v4451_v51 = vrot.slane %v4441_v23, %v6915_v59  ;;  %v4458_v55 = vrot.slane %v4442_v30, %v6915_v59  ;;  %v369_v14 = vpop.xlane.xlu0 %368 }
 0x18d   : > { %v2102_v26 = vrot.slane %v7807_v40, %v6891_v36  ;;  %v4465_v56 = vrot.slane %v4443_v17, %v6915_v59  ;;  %v2106_v9 = vrot.slane %v7807_v40, %v6894_v37  ;;  %v2110_v60 = vrot.slane %v7807_v40, %v6897_v41 }
 0x18e   : > { %v4472_v61 = vrot.slane %v4444_v2, %v6915_v59  ;;  %v4391_v5 = vcombine.low %v4383_v39, %v4390_v35  ;;  %v4473_v10 = vcombine.low %v4451_v51, %v4458_v55  ;;  %v2114_v19 = vrot.slane %v7807_v40, %v6900_v42 }
 0x18f   : > { %v2118_v22 = vrot.slane %v7807_v40, %v6903_v48  ;;  %v2122_v20 = vrot.slane %v7807_v40, %v6906_v49  ;;  %v2126_v34 = vrot.slane %v7807_v40, %v6909_v53  ;;  %v2130_v24 = vrot.slane %v7807_v40, %v6912_v54 }
 0x190   : > { %v4474_v16 = vcombine.low %v4465_v56, %v4472_v61  ;;  %5824 = vperm.xlu1 %6470, %v4391_v5   ;;  %v4481_v63 = vrot.slane %v4473_v10, %v6915_v59  ;;  %v4980_v28 = vcombine.low %v2102_v26, %v2106_v9  ;;  %v4981_v4 = vcombine.low %v2110_v60, %v2114_v19 }
 0x191   : > { %v1814_v58 = vrot.slane %v7774_v8, %v6891_v36  ;;  %v4982_v29 = vcombine.low %v2118_v22, %v2122_v20  ;;  %v4983_v15 = vcombine.low %v2126_v34, %v2130_v24  ;;  %v1818_v0 = vrot.slane %v7774_v8, %v6894_v37 }
 0x192   : > { %v4488_v62 = vrot.slane %v4474_v16, %v6915_v59  ;;  %v4990_v43 = vrot.slane %v4980_v28, %v6915_v59  ;;  %v4997_v1 = vrot.slane %v4981_v4, %v6915_v59  ;;  %v1822_v40 = vrot.slane %v7774_v8, %v6897_v41 }
 0x193   : > { %v1826_v6 = vrot.slane %v7774_v8, %v6900_v42  ;;  %v5004_v13 = vrot.slane %v4982_v29, %v6915_v59  ;;  %v5011_v11 = vrot.slane %v4983_v15, %v6915_v59  ;;  %v1830_v27 = vrot.slane %v7774_v8, %v6903_v48 }
 0x194   : > { %v4489_v3 = vcombine.low %v4481_v63, %v4488_v62  ;;  %v5012_v21 = vcombine.low %v4990_v43, %v4997_v1  ;;  %v1834_v38 = vrot.slane %v7774_v8, %v6906_v49  ;;  %v1838_v33 = vrot.slane %v7774_v8, %v6909_v53 }
 0x195   : > { %v1842_v39 = vrot.slane %v7774_v8, %v6912_v54  ;;  %v7903_v23 = vmul.f32 0.020408163, %v369_v14  ;;  %v5013_v30 = vcombine.low %v5004_v13, %v5011_v11  ;;  %v4539_v17 = vcombine.low %v1814_v58, %v1818_v0 }
 0x196   : > { %5830 = vperm.xlu1 %6470, %v4489_v3   ;;  %v4540_v2 = vcombine.low %v1822_v40, %v1826_v6  ;;  %v7905_v35 = vmul.f32 0.020408163, %v378_v12  ;;  %v5020_v51 = vrot.slane %v5012_v21, %v6915_v59  ;;  %v4541_v55 = vcombine.low %v1830_v27, %v1834_v38  ;;  %v375_v21 = vpop.xlane.xlu0 %374 }
 0x197   : > { %v4542_v26 = vcombine.low %v1838_v33, %v1842_v39  ;;  %v5027_v56 = vrot.slane %v5013_v30, %v6915_v59  ;;  %v4549_v61 = vrot.slane %v4539_v17, %v6915_v59  ;;  %v2166_v8 = vrot.slane %v7832_v50, %v6891_v36 }
 0x198   : > { %v4556_v9 = vrot.slane %v4540_v2, %v6915_v59  ;;  %v4563_v60 = vrot.slane %v4541_v55, %v6915_v59  ;;  %v2170_v10 = vrot.slane %v7832_v50, %v6894_v37  ;;  %v2174_v19 = vrot.slane %v7832_v50, %v6897_v41 }
 0x199   : > { %v4570_v5 = vrot.slane %v4542_v26, %v6915_v59  ;;  %v5028_v22 = vcombine.low %v5020_v51, %v5027_v56  ;;  %v2178_v20 = vrot.slane %v7832_v50, %v6900_v42  ;;  %v2182_v34 = vrot.slane %v7832_v50, %v6903_v48 }
 0x19a   : > { %v4571_v16 = vcombine.low %v4549_v61, %v4556_v9  ;;  %v2186_v63 = vrot.slane %v7832_v50, %v6906_v49  ;;  %v2190_v28 = vrot.slane %v7832_v50, %v6909_v53  ;;  %v2194_v4 = vrot.slane %v7832_v50, %v6912_v54 }
 0x19b   : > { %v4572_v24 = vcombine.low %v4563_v60, %v4570_v5  ;;  %5863 = vperm.xlu0 %6469, %v5028_v22   ;;  %v5078_v62 = vcombine.low %v2166_v8, %v2170_v10  ;;  %v5079_v29 = vcombine.low %v2174_v19, %v2178_v20  ;;  %v2070_v15 = vrot.slane %v7829_v46, %v6891_v36 }
 0x19c   : > { %v4579_v58 = vrot.slane %v4571_v16, %v6915_v59  ;;  %v5080_v43 = vcombine.low %v2182_v34, %v2186_v63  ;;  %v5081_v1 = vcombine.low %v2190_v28, %v2194_v4  ;;  %v2074_v40 = vrot.slane %v7829_v46, %v6894_v37 }
 0x19d   : > { %v4586_v0 = vrot.slane %v4572_v24, %v6915_v59  ;;  %v5088_v6 = vrot.slane %v5078_v62, %v6915_v59  ;;  %v5095_v3 = vrot.slane %v5079_v29, %v6915_v59  ;;  %v2078_v50 = vrot.slane %v7829_v46, %v6897_v41 }
 0x19e   : > { %v2082_v12 = vrot.slane %v7829_v46, %v6900_v42  ;;  %v5102_v11 = vrot.slane %v5080_v43, %v6915_v59  ;;  %v5109_v27 = vrot.slane %v5081_v1, %v6915_v59  ;;  %v2086_v14 = vrot.slane %v7829_v46, %v6903_v48 }
 0x19f   : > { %v4587_v13 = vcombine.low %v4579_v58, %v4586_v0  ;;  %v5110_v38 = vcombine.low %v5088_v6, %v5095_v3  ;;  %v2090_v33 = vrot.slane %v7829_v46, %v6906_v49  ;;  %v2094_v39 = vrot.slane %v7829_v46, %v6909_v53 }
 0x1a0   : > { %v2098_v30 = vrot.slane %v7829_v46, %v6912_v54  ;;  %v7951_v17 = vmul.f32 0.020408163, %v375_v21  ;;  %v5111_v2 = vcombine.low %v5102_v11, %v5109_v27  ;;  %v4931_v51 = vcombine.low %v2070_v15, %v2074_v40 }
 0x1a1   : > { %5836 = vperm.xlu1 %6470, %v4587_v13   ;;  %v4932_v55 = vcombine.low %v2078_v50, %v2082_v12  ;;  %v5118_v26 = vrot.slane %v5110_v38, %v6915_v59  ;;  %v4933_v56 = vcombine.low %v2086_v14, %v2090_v33  ;;  %v2230_v9 = vrot.slane %v7858_v47, %v6891_v36  ;;  %v384_v50 = vpop.xlane.xlu1 %383 }
 0x1a2   : > { %v4934_v61 = vcombine.low %v2094_v39, %v2098_v30  ;;  %v5125_v8 = vrot.slane %v5111_v2, %v6915_v59  ;;  %v4941_v60 = vrot.slane %v4931_v51, %v6915_v59  ;;  %v2234_v46 = vrot.slane %v7858_v47, %v6894_v37 }
 0x1a3   : > { %v4948_v5 = vrot.slane %v4932_v55, %v6915_v59  ;;  %v4955_v10 = vrot.slane %v4933_v56, %v6915_v59  ;;  %v2238_v22 = vrot.slane %v7858_v47, %v6897_v41  ;;  %v2242_v16 = vrot.slane %v7858_v47, %v6900_v42 }
 0x1a4   : > { %v4962_v19 = vrot.slane %v4934_v61, %v6915_v59  ;;  %v5126_v20 = vcombine.low %v5118_v26, %v5125_v8  ;;  %v2246_v24 = vrot.slane %v7858_v47, %v6903_v48  ;;  %v2250_v63 = vrot.slane %v7858_v47, %v6906_v49 }
 0x1a5   : > { %v4963_v34 = vcombine.low %v4941_v60, %v4948_v5  ;;  %v2254_v4 = vrot.slane %v7858_v47, %v6909_v53  ;;  %v2258_v58 = vrot.slane %v7858_v47, %v6912_v54  ;;  %v5176_v62 = vcombine.low %v2230_v9, %v2234_v46  ;;  %v8001_v60 = vpop.xlane.xlu1 %389 }
 0x1a6   : > { %v4964_v28 = vcombine.low %v4955_v10, %v4962_v19  ;;  %5869 = vperm.xlu0 %6469, %v5126_v20   ;;  %v5177_v15 = vcombine.low %v2238_v22, %v2242_v16  ;;  %v5178_v0 = vcombine.low %v2246_v24, %v2250_v63  ;;  %v2134_v43 = vrot.slane %v7856_v45, %v6891_v36 }
 0x1a7   : > { %v4971_v29 = vrot.slane %v4963_v34, %v6915_v59  ;;  %v5179_v40 = vcombine.low %v2254_v4, %v2258_v58  ;;  %v5186_v6 = vrot.slane %v5176_v62, %v6915_v59  ;;  %v2138_v3 = vrot.slane %v7856_v45, %v6894_v37 }
 0x1a8   : > { %v4978_v1 = vrot.slane %v4964_v28, %v6915_v59  ;;  %v5193_v47 = vrot.slane %v5177_v15, %v6915_v59  ;;  %v5200_v12 = vrot.slane %v5178_v0, %v6915_v59  ;;  %v2142_v13 = vrot.slane %v7856_v45, %v6897_v41 }
 0x1a9   : > { %v2146_v11 = vrot.slane %v7856_v45, %v6900_v42  ;;  %v5207_v14 = vrot.slane %v5179_v40, %v6915_v59  ;;  %v2150_v21 = vrot.slane %v7856_v45, %v6903_v48  ;;  %v2154_v38 = vrot.slane %v7856_v45, %v6906_v49  ;;  %v8023_v0 = vpop.xlane.xlu1 %395 }
 0x1aa   : > { %v4979_v27 = vcombine.low %v4971_v29, %v4978_v1  ;;  %v5208_v33 = vcombine.low %v5186_v6, %v5193_v47  ;;  %v2158_v39 = vrot.slane %v7856_v45, %v6909_v53  ;;  %v2162_v30 = vrot.slane %v7856_v45, %v6912_v54 }
 0x1ab   : > { %v5029_v2 = vcombine.low %v2134_v43, %v2138_v3  ;;  %v7997_v51 = vmul.f32 0.020408163, %v384_v50  ;;  %v5209_v55 = vcombine.low %v5200_v12, %v5207_v14  ;;  %v5030_v26 = vcombine.low %v2142_v13, %v2146_v11 }
 0x1ac   : > { %5860 = vperm.xlu1 %6470, %v4979_v27   ;;  %v5031_v56 = vcombine.low %v2150_v21, %v2154_v38  ;;  %v5216_v61 = vrot.slane %v5208_v33, %v6915_v59  ;;  %v5032_v9 = vcombine.low %v2158_v39, %v2162_v30  ;;  %v2294_v5 = vrot.slane %v7905_v35, %v6891_v36  ;;  %v381_v30 = vpop.xlane.xlu0 %380 }
 0x1ad   : > { %v5039_v8 = vrot.slane %v5029_v2, %v6915_v59  ;;  %v5223_v46 = vrot.slane %v5209_v55, %v6915_v59  ;;  %v5046_v45 = vrot.slane %v5030_v26, %v6915_v59  ;;  %v2298_v19 = vrot.slane %v7905_v35, %v6894_v37  ;;  %v8043_v39 = vpop.xlane.xlu1 %401 }
 0x1ae   : > { %v5053_v10 = vrot.slane %v5031_v56, %v6915_v59  ;;  %v5060_v22 = vrot.slane %v5032_v9, %v6915_v59  ;;  %v2302_v16 = vrot.slane %v7905_v35, %v6897_v41  ;;  %v2306_v20 = vrot.slane %v7905_v35, %v6900_v42 }
 0x1af   : > { %v2310_v34 = vrot.slane %v7905_v35, %v6903_v48  ;;  %v5224_v24 = vcombine.low %v5216_v61, %v5223_v46  ;;  %v5061_v63 = vcombine.low %v5039_v8, %v5046_v45  ;;  %v2314_v28 = vrot.slane %v7905_v35, %v6906_v49 }
 0x1b0   : > { %v2318_v4 = vrot.slane %v7905_v35, %v6909_v53  ;;  %v5062_v58 = vcombine.low %v5053_v10, %v5060_v22  ;;  %v2322_v62 = vrot.slane %v7905_v35, %v6912_v54  ;;  %v5274_v29 = vcombine.low %v2294_v5, %v2298_v19 }
 0x1b1   : > { %v5275_v15 = vcombine.low %v2302_v16, %v2306_v20  ;;  %5875 = vperm.xlu0 %6469, %v5224_v24   ;;  %v5069_v43 = vrot.slane %v5061_v63, %v6915_v59  ;;  %v5276_v1 = vcombine.low %v2310_v34, %v2314_v28  ;;  %v2198_v40 = vrot.slane %v7903_v23, %v6891_v36  ;;  %v8062_v34 = vpop.permute.xlu1 %5719 }
 0x1b2   : > { %v2202_v6 = vrot.slane %v7903_v23, %v6894_v37  ;;  %v5076_v3 = vrot.slane %v5062_v58, %v6915_v59  ;;  %v5277_v50 = vcombine.low %v2318_v4, %v2322_v62  ;;  %v5284_v47 = vrot.slane %v5274_v29, %v6915_v59 }
 0x1b3   : > { %v5291_v35 = vrot.slane %v5275_v15, %v6915_v59  ;;  %v5298_v12 = vrot.slane %v5276_v1, %v6915_v59  ;;  %v2206_v13 = vrot.slane %v7903_v23, %v6897_v41  ;;  %v2210_v11 = vrot.slane %v7903_v23, %v6900_v42 }
 0x1b4   : > { %v2214_v27 = vrot.slane %v7903_v23, %v6903_v48  ;;  %v5077_v14 = vcombine.low %v5069_v43, %v5076_v3  ;;  %v5305_v21 = vrot.slane %v5277_v50, %v6915_v59  ;;  %v2218_v33 = vrot.slane %v7903_v23, %v6906_v49 }
 0x1b5   : > { %v5306_v38 = vcombine.low %v5284_v47, %v5291_v35  ;;  %v2222_v2 = vrot.slane %v7903_v23, %v6909_v53  ;;  %v2226_v55 = vrot.slane %v7903_v23, %v6912_v54  ;;  %v5127_v26 = vcombine.low %v2198_v40, %v2202_v6 }
 0x1b6   : > { %v5128_v56 = vcombine.low %v2206_v13, %v2210_v11  ;;  %v8049_v61 = vmul.f32 0.020408163, %v381_v30  ;;  %5866 = vperm.xlu1 %6470, %v5077_v14   ;;  %v5307_v9 = vcombine.low %v5298_v12, %v5305_v21  ;;  %v5129_v5 = vcombine.low %v2214_v27, %v2218_v33  ;;  %v387_v27 = vpop.xlane.xlu0 %386  ;;  %v8091_v30 = vpop.permute.xlu1 %5722 }
 0x1b7   : > { %v5314_v8 = vrot.slane %v5306_v38, %v6915_v59  ;;  %v5130_v46 = vcombine.low %v2222_v2, %v2226_v55  ;;  %v5137_v45 = vrot.slane %v5127_v26, %v6915_v59  ;;  %v2358_v19 = vrot.slane %v7997_v51, %v6891_v36 }
 0x1b8   : > { %v5144_v10 = vrot.slane %v5128_v56, %v6915_v59  ;;  %v5321_v22 = vrot.slane %v5307_v9, %v6915_v59  ;;  %v5151_v23 = vrot.slane %v5129_v5, %v6915_v59  ;;  %v2362_v16 = vrot.slane %v7997_v51, %v6894_v37 }
 0x1b9   : > { %v2366_v20 = vrot.slane %v7997_v51, %v6897_v41  ;;  %v5158_v24 = vrot.slane %v5130_v46, %v6915_v59  ;;  %v2370_v28 = vrot.slane %v7997_v51, %v6900_v42  ;;  %v2374_v4 = vrot.slane %v7997_v51, %v6903_v48 }
 0x1ba   : > { %v5159_v63 = vcombine.low %v5137_v45, %v5144_v10  ;;  %v5322_v58 = vcombine.low %v5314_v8, %v5321_v22  ;;  %v2378_v62 = vrot.slane %v7997_v51, %v6906_v49  ;;  %v2382_v29 = vrot.slane %v7997_v51, %v6909_v53 }
 0x1bb   : > { %v2386_v15 = vrot.slane %v7997_v51, %v6912_v54  ;;  %v5160_v43 = vcombine.low %v5151_v23, %v5158_v24  ;;  %v5372_v40 = vcombine.low %v2358_v19, %v2362_v16  ;;  %v5373_v6 = vcombine.low %v2366_v20, %v2370_v28 }
 0x1bc   : > { %v5167_v1 = vrot.slane %v5159_v63, %v6915_v59  ;;  %5881 = vperm.xlu0 %6469, %v5322_v58   ;;  %v5374_v3 = vcombine.low %v2374_v4, %v2378_v62  ;;  %v2262_v47 = vrot.slane %v7951_v17, %v6891_v36  ;;  %v2266_v35 = vrot.slane %v7951_v17, %v6894_v37 }
 0x1bd   : > { %v5375_v50 = vcombine.low %v2382_v29, %v2386_v15  ;;  %v5174_v12 = vrot.slane %v5160_v43, %v6915_v59  ;;  %v5382_v13 = vrot.slane %v5372_v40, %v6915_v59  ;;  %v5389_v51 = vrot.slane %v5373_v6, %v6915_v59  ;;  %v8115_v43 = vpop.permute.xlu1 %5725 }
 0x1be   : > { %v2270_v11 = vrot.slane %v7951_v17, %v6897_v41  ;;  %v5396_v14 = vrot.slane %v5374_v3, %v6915_v59  ;;  %v2274_v38 = vrot.slane %v7951_v17, %v6900_v42  ;;  %v2278_v33 = vrot.slane %v7951_v17, %v6903_v48 }
 0x1bf   : > { %v5403_v21 = vrot.slane %v5375_v50, %v6915_v59  ;;  %v5175_v2 = vcombine.low %v5167_v1, %v5174_v12  ;;  %v5404_v55 = vcombine.low %v5382_v13, %v5389_v51  ;;  %v2282_v26 = vrot.slane %v7951_v17, %v6906_v49 }
 0x1c0   : > { %v2286_v56 = vrot.slane %v7951_v17, %v6909_v53  ;;  %v2290_v8 = vrot.slane %v7951_v17, %v6912_v54  ;;  %v5225_v5 = vcombine.low %v2262_v47, %v2266_v35  ;;  %v5226_v46 = vcombine.low %v2270_v11, %v2274_v38 }
 0x1c1   : > { %v5405_v9 = vcombine.low %v5396_v14, %v5403_v21  ;;  %v461_v45 = vmul.f32 0.020408163, %v387_v27  ;;  %5872 = vperm.xlu1 %6470, %v5175_v2   ;;  %v5412_v10 = vrot.slane %v5404_v55, %v6915_v59  ;;  %v5227_v19 = vcombine.low %v2278_v33, %v2282_v26 }
 0x1c2   : > { %v2326_v22 = vrot.slane %v8049_v61, %v6891_v36  ;;  %v5228_v16 = vcombine.low %v2286_v56, %v2290_v8  ;;  %v5235_v20 = vrot.slane %v5225_v5, %v6915_v59  ;;  %v5242_v24 = vrot.slane %v5226_v46, %v6915_v59  ;;  %v8137_v46 = vpop.permute.xlu1 %5728 }
 0x1c3   : > { %v5419_v23 = vrot.slane %v5405_v9, %v6915_v59  ;;  %v5249_v63 = vrot.slane %v5227_v19, %v6915_v59  ;;  %v2330_v17 = vrot.slane %v8049_v61, %v6894_v37  ;;  %v2334_v28 = vrot.slane %v8049_v61, %v6897_v41 }
 0x1c4   : > { %v2338_v4 = vrot.slane %v8049_v61, %v6900_v42  ;;  %v5256_v62 = vrot.slane %v5228_v16, %v6915_v59  ;;  %v5257_v29 = vcombine.low %v5235_v20, %v5242_v24  ;;  %v2342_v15 = vrot.slane %v8049_v61, %v6903_v48 }
 0x1c5   : > { %v5420_v58 = vcombine.low %v5412_v10, %v5419_v23  ;;  %v2346_v1 = vrot.slane %v8049_v61, %v6906_v49  ;;  %v2350_v40 = vrot.slane %v8049_v61, %v6909_v53  ;;  %v2354_v6 = vrot.slane %v8049_v61, %v6912_v54 }
 0x1c6   : > { %v5323_v3 = vcombine.low %v2326_v22, %v2330_v17  ;;  %v5258_v50 = vcombine.low %v5249_v63, %v5256_v62  ;;  %v5265_v47 = vrot.slane %v5257_v29, %v6915_v59  ;;  %v5324_v35 = vcombine.low %v2334_v28, %v2338_v4 }
 0x1c7   : > { %5887 = vperm.xlu0 %6469, %v5420_v58   ;;  %v2390_v12 = vrot.slane %v461_v45, %v6891_v36  ;;  %v5325_v13 = vcombine.low %v2342_v15, %v2346_v1  ;;  %v5326_v51 = vcombine.low %v2350_v40, %v2354_v6  ;;  %v2394_v27 = vrot.slane %v461_v45, %v6894_v37 }
 0x1c8   : > { %v5333_v11 = vrot.slane %v5323_v3, %v6915_v59  ;;  %v5272_v14 = vrot.slane %v5258_v50, %v6915_v59  ;;  %v5340_v21 = vrot.slane %v5324_v35, %v6915_v59  ;;  %v2398_v61 = vrot.slane %v461_v45, %v6897_v41 }
 0x1c9   : > { %v2402_v38 = vrot.slane %v461_v45, %v6900_v42  ;;  %v5347_v33 = vrot.slane %v5325_v13, %v6915_v59  ;;  %v5354_v2 = vrot.slane %v5326_v51, %v6915_v59  ;;  %v2406_v55 = vrot.slane %v461_v45, %v6903_v48 }
 0x1ca   : > { %v2410_v26 = vrot.slane %v461_v45, %v6906_v49  ;;  %v5273_v56 = vcombine.low %v5265_v47, %v5272_v14  ;;  %v5355_v9 = vcombine.low %v5333_v11, %v5340_v21  ;;  %v2414_v8 = vrot.slane %v461_v45, %v6909_v53 }
 0x1cb   : > { %v2418_v5 = vrot.slane %v461_v45, %v6912_v54  ;;  %v5356_v10 = vcombine.low %v5347_v33, %v5354_v2  ;;  %v5421_v19 = vcombine.low %v2390_v12, %v2394_v27  ;;  %v5422_v22 = vcombine.low %v2398_v61, %v2402_v38  ;;  %v8162_v12 = vpop.permute.xlu1 %5731 }
 0x1cc   : > { %v5423_v23 = vcombine.low %v2406_v55, %v2410_v26  ;;  %v462_v16 = vmul.f32 0.020408163, %v8001_v60  ;;  %5878 = vperm.xlu1 %6470, %v5273_v56   ;;  %v5363_v20 = vrot.slane %v5355_v9, %v6915_v59  ;;  %v1878_v63 = vrot.slane %v7803_v32, %v6891_v36 }
 0x1cd   : > { %v5424_v24 = vcombine.low %v2414_v8, %v2418_v5  ;;  %v5370_v17 = vrot.slane %v5356_v10, %v6915_v59  ;;  %v5431_v28 = vrot.slane %v5421_v19, %v6915_v59  ;;  %v5438_v45 = vrot.slane %v5422_v22, %v6915_v59 }
 0x1ce   : > { %v5445_v4 = vrot.slane %v5423_v23, %v6915_v59  ;;  %v1882_v60 = vrot.slane %v7803_v32, %v6894_v37  ;;  %v1886_v62 = vrot.slane %v7803_v32, %v6897_v41  ;;  %v1890_v29 = vrot.slane %v7803_v32, %v6900_v42  ;;  %v393_v23 = vpop.xlane.xlu0 %392 }
 0x1cf   : > { %v5452_v58 = vrot.slane %v5424_v24, %v6915_v59  ;;  %v5371_v15 = vcombine.low %v5363_v20, %v5370_v17  ;;  %v5453_v1 = vcombine.low %v5431_v28, %v5438_v45  ;;  %v1894_v40 = vrot.slane %v7803_v32, %v6903_v48  ;;  %v8178_v17 = vpop.permute.xlu1 %5734 }
 0x1d0   : > { %v1898_v6 = vrot.slane %v7803_v32, %v6906_v49  ;;  %v1902_v50 = vrot.slane %v7803_v32, %v6909_v53  ;;  %v1906_v47 = vrot.slane %v7803_v32, %v6912_v54  ;;  %v4637_v35 = vcombine.low %v1878_v63, %v1882_v60 }
 0x1d1   : > { %v5454_v3 = vcombine.low %v5445_v4, %v5452_v58  ;;  %5884 = vperm.xlu1 %6470, %v5371_v15   ;;  %v5461_v13 = vrot.slane %v5453_v1, %v6915_v59  ;;  %v4638_v51 = vcombine.low %v1886_v62, %v1890_v29  ;;  %v2422_v27 = vrot.slane %v462_v16, %v6891_v36 }
 0x1d2   : > { %v4639_v11 = vcombine.low %v1894_v40, %v1898_v6  ;;  %v4640_v21 = vcombine.low %v1902_v50, %v1906_v47  ;;  %v4647_v61 = vrot.slane %v4637_v35, %v6915_v59  ;;  %v2426_v38 = vrot.slane %v462_v16, %v6894_v37 }
 0x1d3   : > { %v5468_v14 = vrot.slane %v5454_v3, %v6915_v59  ;;  %v4654_v33 = vrot.slane %v4638_v51, %v6915_v59  ;;  %v2430_v2 = vrot.slane %v462_v16, %v6897_v41  ;;  %v2434_v55 = vrot.slane %v462_v16, %v6900_v42 }
 0x1d4   : > { %v4661_v32 = vrot.slane %v4639_v11, %v6915_v59  ;;  %v4668_v56 = vrot.slane %v4640_v21, %v6915_v59  ;;  %v2438_v9 = vrot.slane %v462_v16, %v6903_v48  ;;  %v2442_v8 = vrot.slane %v462_v16, %v6906_v49 }
 0x1d5   : > { %v5469_v26 = vcombine.low %v5461_v13, %v5468_v14  ;;  %v4669_v5 = vcombine.low %v4647_v61, %v4654_v33  ;;  %v2446_v10 = vrot.slane %v462_v16, %v6909_v53  ;;  %v2450_v19 = vrot.slane %v462_v16, %v6912_v54  ;;  %v8208_v33 = vpop.xlane.xlu0 %398 }
 0x1d6   : > { %v5470_v22 = vcombine.low %v2422_v27, %v2426_v38  ;;  %v4670_v20 = vcombine.low %v4661_v32, %v4668_v56  ;;  %v5471_v24 = vcombine.low %v2430_v2, %v2434_v55  ;;  %v5472_v63 = vcombine.low %v2438_v9, %v2442_v8  ;;  %v8206_v38 = vpop.permute.xlu1 %5737 }
 0x1d7   : > { %5890 = vperm.xlu0 %6469, %v5469_v26   ;;  %v4677_v28 = vrot.slane %v4669_v5, %v6915_v59  ;;  %v5473_v45 = vcombine.low %v2446_v10, %v2450_v19  ;;  %v1910_v16 = vrot.slane %v7777_v44, %v6891_v36  ;;  %v463_v29 = vmul.f32 0.020408163, %v393_v23 }
 0x1d8   : > { %v5480_v4 = vrot.slane %v5470_v22, %v6915_v59  ;;  %v4684_v58 = vrot.slane %v4670_v20, %v6915_v59  ;;  %v5487_v60 = vrot.slane %v5471_v24, %v6915_v59  ;;  %v5494_v62 = vrot.slane %v5472_v63, %v6915_v59 }
 0x1d9   : > { %v5501_v15 = vrot.slane %v5473_v45, %v6915_v59  ;;  %v1914_v1 = vrot.slane %v7777_v44, %v6894_v37  ;;  %v1918_v40 = vrot.slane %v7777_v44, %v6897_v41  ;;  %v1922_v50 = vrot.slane %v7777_v44, %v6900_v42  ;;  %v8222_v63 = vpop.permute.xlu0 %5716 }
 0x1da   : > { %v4685_v6 = vcombine.low %v4677_v28, %v4684_v58  ;;  %v5502_v3 = vcombine.low %v5480_v4, %v5487_v60  ;;  %v1926_v47 = vrot.slane %v7777_v44, %v6903_v48  ;;  %v8197_v35 = vmul.f32 0.020408163, %v7768_v18 }
 0x1db   : > { %v5503_v13 = vcombine.low %v5494_v62, %v5501_v15  ;;  %v1930_v51 = vrot.slane %v7777_v44, %v6906_v49  ;;  %v1934_v11 = vrot.slane %v7777_v44, %v6909_v53  ;;  %v1938_v14 = vrot.slane %v7777_v44, %v6912_v54 }
 0x1dc   : > { %5842 = vperm.xlu1 %6470, %v4685_v6   ;;  %v5510_v27 = vrot.slane %v5502_v3, %v6915_v59  ;;  %v4686_v21 = vcombine.low %v1910_v16, %v1914_v1  ;;  %v4687_v61 = vcombine.low %v1918_v40, %v1922_v50  ;;  %v2454_v2 = vrot.slane %v463_v29, %v6891_v36  ;;  %v8226_v16 = vpop.permute.xlu1 %5740 }
 0x1dd   : > { %v5517_v18 = vrot.slane %v5503_v13, %v6915_v59  ;;  %v4688_v32 = vcombine.low %v1926_v47, %v1930_v51  ;;  %v2458_v55 = vrot.slane %v463_v29, %v6894_v37  ;;  %v4689_v26 = vcombine.low %v1934_v11, %v1938_v14 }
 0x1de   : > { %v4696_v56 = vrot.slane %v4686_v21, %v6915_v59  ;;  %v4703_v9 = vrot.slane %v4687_v61, %v6915_v59  ;;  %v2462_v44 = vrot.slane %v463_v29, %v6897_v41  ;;  %v2466_v10 = vrot.slane %v463_v29, %v6900_v42 }
 0x1df   : > { %v5518_v8 = vcombine.low %v5510_v27, %v5517_v18  ;;  %v4710_v5 = vrot.slane %v4688_v32, %v6915_v59  ;;  %v2470_v19 = vrot.slane %v463_v29, %v6903_v48  ;;  %v4717_v22 = vrot.slane %v4689_v26, %v6915_v59  ;;  %v8240_v27 = vpop.permute.xlu0 %5743 }
 0x1e0   : > { %v4718_v23 = vcombine.low %v4696_v56, %v4703_v9  ;;  %v2474_v20 = vrot.slane %v463_v29, %v6906_v49  ;;  %v2478_v24 = vrot.slane %v463_v29, %v6909_v53  ;;  %v2482_v28 = vrot.slane %v463_v29, %v6912_v54 }
 0x1e1   : > { %5893 = vperm.xlu0 %6469, %v5518_v8   ;;  %v5519_v45 = vcombine.low %v2454_v2, %v2458_v55  ;;  %v5520_v4 = vcombine.low %v2462_v44, %v2466_v10  ;;  %v4719_v58 = vcombine.low %v4710_v5, %v4717_v22  ;;  %v1942_v29 = vrot.slane %v8197_v35, %v6891_v36  ;;  %v8254_v8 = vpop.permute.xlu1 %5746 }
 0x1e2   : > { %v4726_v60 = vrot.slane %v4718_v23, %v6915_v59  ;;  %v5521_v62 = vcombine.low %v2470_v19, %v2474_v20  ;;  %v5522_v15 = vcombine.low %v2478_v24, %v2482_v28  ;;  %v1946_v50 = vrot.slane %v8197_v35, %v6894_v37 }
 0x1e3   : > { %v5529_v1 = vrot.slane %v5519_v45, %v6915_v59  ;;  %v5536_v40 = vrot.slane %v5520_v4, %v6915_v59  ;;  %v4733_v6 = vrot.slane %v4719_v58, %v6915_v59  ;;  %v464_v47 = vmul.f32 0.020408163, %v8023_v0  ;;  %v8266_v58 = vpop.permute.xlu0 %5749 }
 0x1e4   : > { %v5543_v3 = vrot.slane %v5521_v62, %v6915_v59  ;;  %v5550_v13 = vrot.slane %v5522_v15, %v6915_v59  ;;  %v1950_v11 = vrot.slane %v8197_v35, %v6897_v41  ;;  %v1954_v21 = vrot.slane %v8197_v35, %v6900_v42 }
 0x1e5   : > { %v5551_v51 = vcombine.low %v5529_v1, %v5536_v40  ;;  %v4734_v14 = vcombine.low %v4726_v60, %v4733_v6  ;;  %v1958_v61 = vrot.slane %v8197_v35, %v6903_v48  ;;  %v1962_v18 = vrot.slane %v8197_v35, %v6906_v49 }
 0x1e6   : > { %v448_v0 = vmul.f32 0.020408163, %v7726_v57  ;;  %v5552_v32 = vcombine.low %v5543_v3, %v5550_v13  ;;  %v1966_v55 = vrot.slane %v8197_v35, %v6909_v53  ;;  %v1970_v26 = vrot.slane %v8197_v35, %v6912_v54 }
 0x1e7   : > { %v5559_v2 = vrot.slane %v5551_v51, %v6915_v59  ;;  %5845 = vperm.xlu1 %6470, %v4734_v14   ;;  %v4735_v56 = vcombine.low %v1942_v29, %v1946_v50  ;;  %v4736_v9 = vcombine.low %v1950_v11, %v1954_v21  ;;  %v4737_v44 = vcombine.low %v1958_v61, %v1962_v18  ;;  %v8272_v51 = vpop.permute.xlu1 %5752 }
 0x1e8   : > { %v5566_v5 = vrot.slane %v5552_v32, %v6915_v59  ;;  %v2486_v10 = vrot.slane %v464_v47, %v6891_v36  ;;  %v2490_v57 = vrot.slane %v464_v47, %v6894_v37  ;;  %v2494_v19 = vrot.slane %v464_v47, %v6897_v41 }
 0x1e9   : > { %v4738_v22 = vcombine.low %v1966_v55, %v1970_v26  ;;  %v4745_v23 = vrot.slane %v4735_v56, %v6915_v59  ;;  %v4752_v20 = vrot.slane %v4736_v9, %v6915_v59  ;;  %v4759_v35 = vrot.slane %v4737_v44, %v6915_v59  ;;  %v8284_v9 = vpop.permute.xlu0 %5755 }
 0x1ea   : > { %v5567_v24 = vcombine.low %v5559_v2, %v5566_v5  ;;  %v2498_v28 = vrot.slane %v464_v47, %v6900_v42  ;;  %v2502_v45 = vrot.slane %v464_v47, %v6903_v48  ;;  %v2506_v4 = vrot.slane %v464_v47, %v6906_v49 }
 0x1eb   : > { %v4766_v60 = vrot.slane %v4738_v22, %v6915_v59  ;;  %v4767_v62 = vcombine.low %v4745_v23, %v4752_v20  ;;  %v2510_v15 = vrot.slane %v464_v47, %v6909_v53  ;;  %v2514_v1 = vrot.slane %v464_v47, %v6912_v54 }
 0x1ec   : > { %5896 = vperm.xlu0 %6469, %v5567_v24   ;;  %v5568_v40 = vcombine.low %v2486_v10, %v2490_v57  ;;  %v5569_v6 = vcombine.low %v2494_v19, %v2498_v28  ;;  %v5570_v3 = vcombine.low %v2502_v45, %v2506_v4  ;;  %v1974_v18 = vrot.slane %v448_v0, %v6891_v36  ;;  %v8293_v45 = vpop.permute.xlu1 %5758 }
 0x1ed   : > { %v4768_v29 = vcombine.low %v4759_v35, %v4766_v60  ;;  %v4775_v50 = vrot.slane %v4767_v62, %v6915_v59  ;;  %v5571_v13 = vcombine.low %v2510_v15, %v2514_v1  ;;  %v1978_v32 = vrot.slane %v448_v0, %v6894_v37 }
 0x1ee   : > { %v5578_v11 = vrot.slane %v5568_v40, %v6915_v59  ;;  %v5585_v14 = vrot.slane %v5569_v6, %v6915_v59  ;;  %v5592_v21 = vrot.slane %v5570_v3, %v6915_v59  ;;  %v465_v2 = vmul.f32 0.020408163, %v8208_v33 }
 0x1ef   : > { %v4782_v61 = vrot.slane %v4768_v29, %v6915_v59  ;;  %v5599_v47 = vrot.slane %v5571_v13, %v6915_v59  ;;  %v1982_v26 = vrot.slane %v448_v0, %v6897_v41  ;;  %v1986_v56 = vrot.slane %v448_v0, %v6900_v42  ;;  %v8305_v13 = vpop.permute.xlu0 %5761 }
 0x1f0   : > { %v5600_v55 = vcombine.low %v5578_v11, %v5585_v14  ;;  %v1990_v10 = vrot.slane %v448_v0, %v6903_v48  ;;  %v1994_v57 = vrot.slane %v448_v0, %v6906_v49  ;;  %v449_v19 = vmul.f32 0.020408163, %v7797_v7  ;;  %8695 = vst [vmem:[#allocation6_spill] sm:$0xff] %v8305_v13 }
 0x1f1   : > { %v4783_v44 = vcombine.low %v4775_v50, %v4782_v61  ;;  %v5601_v5 = vcombine.low %v5592_v21, %v5599_v47  ;;  %v1998_v23 = vrot.slane %v448_v0, %v6909_v53  ;;  %v2002_v33 = vrot.slane %v448_v0, %v6912_v54 }
 0x1f2   : > { %v5608_v22 = vrot.slane %v5600_v55, %v6915_v59  ;;  %v4784_v35 = vcombine.low %v1974_v18, %v1978_v32  ;;  %v4785_v24 = vcombine.low %v1982_v26, %v1986_v56  ;;  %v4786_v28 = vcombine.low %v1990_v10, %v1994_v57 }
 0x1f3   : > { %5848 = vperm.xlu1 %6470, %v4783_v44   ;;  %v5615_v20 = vrot.slane %v5601_v5, %v6915_v59  ;;  %v4787_v4 = vcombine.low %v1998_v23, %v2002_v33  ;;  %v2518_v60 = vrot.slane %v465_v2, %v6891_v36  ;;  %v2522_v62 = vrot.slane %v465_v2, %v6894_v37  ;;  %v8311_v44 = vpop.permute.xlu1 %5764 }
 0x1f4   : > { %v2526_v7 = vrot.slane %v465_v2, %v6897_v41  ;;  %v4794_v1 = vrot.slane %v4784_v35, %v6915_v59  ;;  %v4801_v0 = vrot.slane %v4785_v24, %v6915_v59  ;;  %v4808_v40 = vrot.slane %v4786_v28, %v6915_v59 }
 0x1f5   : > { %v5616_v15 = vcombine.low %v5608_v22, %v5615_v20  ;;  %v4815_v6 = vrot.slane %v4787_v4, %v6915_v59  ;;  %v2530_v3 = vrot.slane %v465_v2, %v6900_v42  ;;  %v2534_v29 = vrot.slane %v465_v2, %v6903_v48  ;;  %v8322_v4 = vpop.permute.xlu0 %5767 }
 0x1f6   : > { %v2538_v50 = vrot.slane %v465_v2, %v6906_v49  ;;  %v4816_v11 = vcombine.low %v4794_v1, %v4801_v0  ;;  %v2542_v14 = vrot.slane %v465_v2, %v6909_v53  ;;  %v2546_v21 = vrot.slane %v465_v2, %v6912_v54 }
 0x1f7   : > { %5899 = vperm.xlu0 %6469, %v5616_v15   ;;  %v5617_v61 = vcombine.low %v2518_v60, %v2522_v62  ;;  %v4817_v47 = vcombine.low %v4808_v40, %v4815_v6  ;;  %v5618_v18 = vcombine.low %v2526_v7, %v2530_v3  ;;  %v466_v5 = vmul.f32 0.020408163, %v8043_v39 }
 0x1f8   : > { %v5619_v32 = vcombine.low %v2534_v29, %v2538_v50  ;;  %v4824_v55 = vrot.slane %v4816_v11, %v6915_v59  ;;  %v5620_v26 = vcombine.low %v2542_v14, %v2546_v21  ;;  %v2006_v23 = vrot.slane %v449_v19, %v6891_v36  ;;  %v8332_v11 = vpop.permute.xlu1 %5770 }
 0x1f9   : > { %v5627_v56 = vrot.slane %v5617_v61, %v6915_v59  ;;  %v4831_v10 = vrot.slane %v4817_v47, %v6915_v59  ;;  %v5634_v57 = vrot.slane %v5618_v18, %v6915_v59  ;;  %v2010_v33 = vrot.slane %v449_v19, %v6894_v37 }
 0x1fa   : > { %v5641_v22 = vrot.slane %v5619_v32, %v6915_v59  ;;  %v5648_v2 = vrot.slane %v5620_v26, %v6915_v59  ;;  %v2014_v20 = vrot.slane %v449_v19, %v6897_v41  ;;  %v2018_v28 = vrot.slane %v449_v19, %v6900_v42 }
 0x1fb   : > { %v4832_v35 = vcombine.low %v4824_v55, %v4831_v10  ;;  %v5649_v24 = vcombine.low %v5627_v56, %v5634_v57  ;;  %v2022_v60 = vrot.slane %v449_v19, %v6903_v48  ;;  %v2026_v62 = vrot.slane %v449_v19, %v6906_v49  ;;  %v8344_v57 = vpop.permute.xlu0 %5773 }
 0x1fc   : > { %v5650_v39 = vcombine.low %v5641_v22, %v5648_v2  ;;  %v2030_v7 = vrot.slane %v449_v19, %v6909_v53  ;;  %v450_v15 = vmul.f32 0.020408163, %v7755_v52  ;;  %v2034_v0 = vrot.slane %v449_v19, %v6912_v54 }
 0x1fd   : > { %5851 = vperm.xlu1 %6470, %v4832_v35   ;;  %v5657_v1 = vrot.slane %v5649_v24, %v6915_v59  ;;  %v4833_v40 = vcombine.low %v2006_v23, %v2010_v33  ;;  %v4834_v3 = vcombine.low %v2014_v20, %v2018_v28  ;;  %v4835_v29 = vcombine.low %v2022_v60, %v2026_v62  ;;  %v8350_v62 = vpop.permute.xlu1 %5776 }
 0x1fe   : > { %v5664_v6 = vrot.slane %v5650_v39, %v6915_v59  ;;  %v2550_v50 = vrot.slane %v466_v5, %v6891_v36  ;;  %v4836_v14 = vcombine.low %v2030_v7, %v2034_v0  ;;  %v2554_v61 = vrot.slane %v466_v5, %v6894_v37 }
 0x1ff   : > { %v4843_v21 = vrot.slane %v4833_v40, %v6915_v59  ;;  %v2558_v52 = vrot.slane %v466_v5, %v6897_v41  ;;  %v4850_v18 = vrot.slane %v4834_v3, %v6915_v59  ;;  %v4857_v19 = vrot.slane %v4835_v29, %v6915_v59 }
 0x200   : > { %v5665_v47 = vcombine.low %v5657_v1, %v5664_v6  ;;  %v2562_v32 = vrot.slane %v466_v5, %v6900_v42  ;;  %v4864_v55 = vrot.slane %v4836_v14, %v6915_v59  ;;  %v2566_v26 = vrot.slane %v466_v5, %v6903_v48 }
 0x201   : > { %v2570_v56 = vrot.slane %v466_v5, %v6906_v49  ;;  %v2574_v10 = vrot.slane %v466_v5, %v6909_v53  ;;  %v4865_v22 = vcombine.low %v4843_v21, %v4850_v18  ;;  %v2578_v2 = vrot.slane %v466_v5, %v6912_v54 }
 0x202   : > { %5902 = vperm.xlu0 %6469, %v5665_v47   ;;  %v5666_v23 = vcombine.low %v2550_v50, %v2554_v61  ;;  %v5667_v33 = vcombine.low %v2558_v52, %v2562_v32  ;;  %v4866_v20 = vcombine.low %v4857_v19, %v4864_v55  ;;  %v2038_v40 = vrot.slane %v450_v15, %v6891_v36  ;;  %v8358_v50 = vpop.permute.xlu0 %5779  ;;  %v8367_v32 = vpop.permute.xlu1 %5782 }
 0x203   : > { %v5668_v35 = vcombine.low %v2566_v26, %v2570_v56  ;;  %v4873_v24 = vrot.slane %v4865_v22, %v6915_v59  ;;  %v5669_v28 = vcombine.low %v2574_v10, %v2578_v2  ;;  %v2042_v6 = vrot.slane %v450_v15, %v6894_v37 }
 0x204   : > { %v5676_v39 = vrot.slane %v5666_v23, %v6915_v59  ;;  %v5683_v60 = vrot.slane %v5667_v33, %v6915_v59  ;;  %v4880_v7 = vrot.slane %v4866_v20, %v6915_v59  ;;  %v2046_v29 = vrot.slane %v450_v15, %v6897_v41 }
 0x205   : > { %v5690_v1 = vrot.slane %v5668_v35, %v6915_v59  ;;  %v5697_v0 = vrot.slane %v5669_v28, %v6915_v59  ;;  %v2050_v61 = vrot.slane %v450_v15, %v6900_v42  ;;  %v2054_v52 = vrot.slane %v450_v15, %v6903_v48 }
 0x206   : > { %v5698_v5 = vcombine.low %v5676_v39, %v5683_v60  ;;  %v4881_v3 = vcombine.low %v4873_v24, %v4880_v7  ;;  %v2058_v47 = vrot.slane %v450_v15, %v6906_v49  ;;  %v2062_v18 = vrot.slane %v450_v15, %v6909_v53  ;;  %v8372_v49 = vpop.permute.xlu0 %5785  ;;  %v8376_v2 = vpop.permute.xlu1 %5788 }
 0x207   : > { %v5699_v14 = vcombine.low %v5690_v1, %v5697_v0  ;;  %v2066_v37 = vrot.slane %v450_v15, %v6912_v54  ;;  %v4882_v19 = vcombine.low %v2038_v40, %v2042_v6  ;;  %v4883_v41 = vcombine.low %v2046_v29, %v2050_v61 }
 0x208   : > { %v5706_v21 = vrot.slane %v5698_v5, %v6915_v59  ;;  %5854 = vperm.xlu1 %6470, %v4881_v3   ;;  %v4884_v55 = vcombine.low %v2054_v52, %v2058_v47  ;;  %v5908_v23 = vand.u32 127, %v8687_v25 }
 0x209   : > { %v5713_v36 = vrot.slane %v5699_v14, %v6915_v59  ;;  %v4885_v56 = vcombine.low %v2062_v18, %v2066_v37  ;;  %v4892_v42 = vrot.slane %v4882_v19, %v6915_v59  ;;  %v4899_v48 = vrot.slane %v4883_v41, %v6915_v59 }
 0x20a   : > { %v4906_v10 = vrot.slane %v4884_v55, %v6915_v59  ;;  %v5913_v20 = vadd.s32 4294967288, %v5908_v23  ;;  %v8380_v35 = vpop.permute.xlu0 %5791  ;;  %v5920_v24 = vadd.s32 4294967280, %v5908_v23  ;;  %v5927_v28 = vadd.s32 4294967272, %v5908_v23  ;;  %v8385_v0 = vpop.permute.xlu1 %5794 }
 0x20b   : > { %v5714_v26 = vcombine.low %v5706_v21, %v5713_v36  ;;  %v4913_v53 = vrot.slane %v4885_v56, %v6915_v59  ;;  %v4914_v22 = vcombine.low %v4892_v42, %v4899_v48  ;;  %v5934_v60 = vadd.s32 4294967264, %v5908_v23 }
 0x20c   : > { %v5969_v7 = vadd.s32 4294967224, %v5908_v23  ;;  %v8383_v1 = vsub.s32 %v5908_v23, %v6888_v31  ;;  %v8388_v5 = vsub.s32 %v5913_v20, %v6888_v31  ;;  %v5948_v40 = vadd.s32 4294967248, %v5908_v23 }
 0x20d   : > { %5905 = vperm.xlu0 %6469, %v5714_v26   ;;  %v4915_v54 = vcombine.low %v4906_v10, %v4913_v53  ;;  %v4922_v15 = vrot.slane %v4914_v22, %v6915_v59  ;;  %v8391_v6 = vsub.s32 %v5920_v24, %v6888_v31  ;;  %v8394_v3 = vsub.s32 %v5927_v28, %v6888_v31 }
 0x20e   : > { %v5941_v29 = vadd.s32 4294967256, %v5908_v23  ;;  %v8397_v14 = vsub.s32 %v5934_v60, %v6888_v31  ;;  %v8400_v21 = vsub.s32 %v5969_v7, %v6888_v31  ;;  %v5962_v61 = vadd.s32 4294967232, %v5908_v23  ;;  %v5798_v52 = vpop.permute.xlu0 %5797 }
 0x20f   : > { %v4929_v33 = vrot.slane %v4915_v54, %v6915_v59  ;;  %v5983_v47 = vadd.s32 4294967208, %v5908_v23  ;;  %v5955_v18 = vadd.s32 4294967240, %v5908_v23  ;;  %v6025_v36 = vrot.slane %v8322_v4, %v8388_v5 }
 0x210   : > { %v6021_v37 = vrot.slane %v8311_v44, %v8383_v1  ;;  %v8407_v19 = vsub.s32 %v5948_v40, %v6888_v31  ;;  %v5976_v41 = vadd.s32 4294967216, %v5908_v23  ;;  %v6030_v55 = vrot.slane %v8332_v11, %v8391_v6  ;;  %v5801_v44 = vpop.permute.xlu1 %5800 }
 0x211   : > { %v4930_v39 = vcombine.low %v4922_v15, %v4929_v33  ;;  %v8412_v26 = vsub.s32 %v5941_v29, %v6888_v31  ;;  %v6035_v56 = vrot.slane %v8344_v57, %v8394_v3  ;;  %v6040_v4 = vrot.slane %v8350_v62, %v8397_v14 }
 0x212   : > { %v6026_v42 = vsel %vm5918_vm1, %v6025_v36, %v6021_v37  ;;  %v8420_v48 = vsub.s32 %v5962_v61, %v6888_v31  ;;  %v5990_v10 = vadd.s32 4294967200, %v5908_v23  ;;  %v6050_v11 = vrot.slane %v8367_v32, %v8407_v19  ;;  %v5804_v24 = vpop.permute.xlu0 %5803 }
 0x213   : > { %5857 = vperm.xlu1 %6470, %v4930_v39   ;;  %v6031_v53 = vsel %vm5925_vm2, %v6030_v55, %v6026_v42  ;;  %v8426_v22 = vsub.s32 %v5983_v47, %v6888_v31  ;;  %v8429_v57 = vsub.s32 %v5955_v18, %v6888_v31  ;;  %v6045_v54 = vrot.slane %v8358_v50, %v8412_v26 }
 0x214   : > { %v6036_v62 = vsel %vm5932_vm3, %v6035_v56, %v6031_v53  ;;  %v8435_v15 = vsub.s32 %v5976_v41, %v6888_v31  ;;  %v6004_v33 = vadd.s32 4294967184, %v5908_v23  ;;  %v6060_v32 = vrot.slane %v8376_v2, %v8420_v48  ;;  %v5807_v47 = vpop.permute.xlu1 %5806 }
 0x215   : > { %v6041_v20 = vsel %vm5939_vm4, %v6040_v4, %v6036_v62  ;;  %v5997_v28 = vadd.s32 4294967192, %v5908_v23  ;;  %v6055_v39 = vrot.slane %v8372_v49, %v8429_v57  ;;  %v8444_v50 = vsub.s32 %v5990_v10, %v6888_v31 }
 0x216   : > { %v6046_v60 = vsel %vm5946_vm5, %v6045_v54, %v6041_v20  ;;  %v6070_v40 = vrot.slane %v8385_v0, %v8435_v15  ;;  %v6011_v29 = vadd.s32 4294967176, %v5908_v23  ;;  %v6065_v2 = vrot.slane %v8380_v35, %v8400_v21  ;;  %v5810_v35 = vpop.permute.xlu0 %5809 }
 0x217   : > { %v6051_v7 = vsel %vm5953_vm6, %v6050_v11, %v6046_v60  ;;  %v8453_v49 = vsub.s32 %v6004_v33, %v6888_v31  ;;  %v6080_v36 = vrot.slane %v5801_v44, %v8444_v50  ;;  %v8458_v37 = vsub.s32 %v5997_v28, %v6888_v31 }
 0x218   : > { %v6056_v61 = vsel %vm5960_vm7, %v6055_v39, %v6051_v7  ;;  %v6075_v23 = vrot.slane %v5798_v52, %v8426_v22  ;;  %v8465_v56 = vsub.s32 %v6011_v29, %v6888_v31  ;;  %v5813_v54 = vpop.permute.xlu1 %5812  ;;  %v5938_v59 = vrot.slane %v8137_v46, %v8397_v14 }
 0x219   : > { %v6061_v18 = vsel %vm5967_vm8, %v6060_v32, %v6056_v61  ;;  %v6090_v55 = vrot.slane %v5807_v47, %v8453_v49  ;;  %v6085_v42 = vrot.slane %v5804_v24, %v8458_v37 }
 0x21a   : > { %v6066_v0 = vsel %vm5974_vm9, %v6065_v2, %v6061_v18  ;;  %8696 = vst [vmem:[#allocation7_spill] sm:$0xff] %v8465_v56  ;;  %v6095_v52 = vrot.slane %v5810_v35, %v8465_v56  ;;  %v5816_v31 = vpop.permute.xlu0 %5815 }
 0x21b   : > { %v6071_v41 = vsel %vm5981_vm10, %v6070_v40, %v6066_v0 }
 0x21c   : > { %v6076_v4 = vsel %vm5988_vm11, %v6075_v23, %v6071_v41  ;;  %v5819_v33 = vpop.permute.xlu1 %5818 }
 0x21d   : > { %v6081_v44 = vsel %vm5995_vm12, %v6080_v36, %v6076_v4 }
 0x21e   : > { %v6086_v10 = vsel %vm6002_vm13, %v6085_v42, %v6081_v44  ;;  %v8476_v62 = vpop.permute.xlu0 %5821  ;;  %v5917_v42 = vrot.slane %v8062_v34, %v8388_v5  ;;  %v5924_v44 = vrot.slane %v8091_v30, %v8391_v6  ;;  %v5945_v30 = vrot.slane %v8162_v12, %v8412_v26 }
 0x21f   : > { %v6091_v53 = vsel %vm6009_vm14, %v6090_v55, %v6086_v10  ;;  %v5912_v10 = vrot.slane %v8222_v63, %v8383_v1  ;;  %v6104_v12 = vrot.slane %v5816_v31, %v8388_v5 }
 0x220   : > { %v8474_v11 = vsel %vm6016_vm15, %v6095_v52, %v6091_v53  ;;  %v8480_v24 = vpop.permute.xlu1 %5824  ;;  %v5931_v53 = vrot.slane %v8115_v43, %v8394_v3  ;;  %v6109_v43 = vrot.slane %v5819_v33, %v8391_v6  ;;  %v5966_v33 = vrot.slane %v8226_v16, %v8420_v48 }
 0x221   : > { %8697 = vst [vmem:[#allocation8_spill] sm:$0xff] %v8474_v11  ;;  %v5919_v34 = vsel %vm5918_vm1, %v5917_v42, %v5912_v10  ;;  %v5952_v42 = vrot.slane %v8178_v17, %v8407_v19  ;;  %v6114_v16 = vrot.slane %v8476_v62, %v8394_v3 }
 0x222   : > { %v8478_v20 = vpop.permute.xlu0 %5827  ;;  %v5926_v63 = vsel %vm5925_vm2, %v5924_v44, %v5919_v34  ;;  %v5973_v44 = vrot.slane %v8240_v27, %v8400_v21 }
 0x223   : > { %v5933_v56 = vsel %vm5932_vm3, %v5931_v53, %v5926_v63 }
 0x224   : > { %v8484_v28 = vpop.permute.xlu1 %5830 }
 0x226   : > { %v8482_v32 = vpop.permute.xlu0 %5833 }
 0x228   : > { %v8488_v60 = vpop.permute.xlu1 %5836 }
 0x22a   : > { %v8486_v39 = vpop.permute.xlu0 %5839 }
 0x22c   : > { %v5861_v40 = vpop.permute.xlu1 %5860 }
 0x22d   : > { %v6179_v4 = vrot.slane %v5861_v40, %v8383_v1  ;;  %v6100_v40 = vrot.slane %v5813_v54, %v8383_v1 }
 0x22e   : > { %v5864_v7 = vpop.permute.xlu0 %5863 }
 0x22f   : > { %v6183_v25 = vrot.slane %v5864_v7, %v8388_v5  ;;  %v6119_v5 = vrot.slane %v8480_v24, %v8397_v14 }
 0x231   : > { %v5867_v2 = vpop.permute.xlu1 %5866 }
 0x232   : > { %v5870_v29 = vpop.permute.xlu0 %5869  ;;  %v6188_v52 = vrot.slane %v5867_v2, %v8391_v6  ;;  %v6184_v2 = vsel %vm5918_vm1, %v6183_v25, %v6179_v4  ;;  %v5940_v25 = vsel %vm5939_vm4, %v5938_v59, %v5933_v56  ;;  %v5959_v6 = vrot.slane %v8206_v38, %v8429_v57 }
 0x233   : > { %v6193_v1 = vrot.slane %v5870_v29, %v8394_v3  ;;  %v5947_v54 = vsel %vm5946_vm5, %v5945_v30, %v5940_v25  ;;  %v6129_v3 = vrot.slane %v8484_v28, %v8407_v19 }
 0x234   : > { %v6189_v7 = vsel %vm5925_vm2, %v6188_v52, %v6184_v2  ;;  %v5954_v38 = vsel %vm5953_vm6, %v5952_v42, %v5947_v54 }
 0x235   : > { %v6194_v4 = vsel %vm5932_vm3, %v6193_v1, %v6189_v7  ;;  %v5961_v52 = vsel %vm5960_vm7, %v5959_v6, %v5954_v38 }
 0x236   : > { %v5876_v61 = vpop.permute.xlu0 %5875 }
 0x237   : > { %v6203_v29 = vrot.slane %v5876_v61, %v8412_v26  ;;  %v6124_v61 = vrot.slane %v8478_v20, %v8412_v26 }
 0x23a   : > { %v5882_v18 = vpop.permute.xlu0 %5881 }
 0x23b   : > { %v6213_v34 = vrot.slane %v5882_v18, %v8429_v57  ;;  %v5987_v18 = vrot.slane %v8266_v58, %v8426_v22 }
 0x23c   : > { %v5873_v47 = vpop.permute.xlu1 %5872 }
 0x23d   : > { %v6198_v13 = vrot.slane %v5873_v47, %v8397_v14  ;;  %v6105_v47 = vsel %vm5918_vm1, %v6104_v12, %v6100_v40  ;;  %v5968_v14 = vsel %vm5967_vm8, %v5966_v33, %v5961_v52  ;;  %v8698_v33 = vld [vmem:[#allocation7_spill] sm:$0xff] }
 0x23e   : > { %v6110_v17 = vsel %vm5925_vm2, %v6109_v43, %v6105_v47  ;;  %v6134_v43 = vrot.slane %v8482_v32, %v8429_v57  ;;  %v8699_v47 = vld [vmem:[#allocation6_spill] sm:$0xff] }
 0x23f   : > { %v6199_v31 = vsel %vm5939_vm4, %v6198_v13, %v6194_v4  ;;  %v5980_v13 = vrot.slane %v8254_v8, %v8435_v15  ;;  %v6115_v24 = vsel %vm5932_vm3, %v6114_v16, %v6110_v17  ;;  %v5975_v8 = vsel %vm5974_vm9, %v5973_v44, %v5968_v14  ;;  %v8700_v44 = vld [vmem:[#allocation8_spill] sm:$0xff] }
 0x240   : > { %v6120_v53 = vsel %vm5939_vm4, %v6119_v5, %v6115_v24  ;;  %v6015_v4 = vrot.slane %v8699_v47, %v8698_v33 }
 0x241   : > { %v5982_v40 = vsel %vm5981_vm10, %v5980_v13, %v5975_v8  ;;  %v6125_v2 = vsel %vm5946_vm5, %v6124_v61, %v6120_v53  ;;  %v8701_v53 = vld [vmem:[#allocation5_spill] sm:$0xff]  ;;  %v8702_v61 = vlaneseq }
 0x242   : > { %v8490_v23 = vpop.permute.xlu0 %5887  ;;  %v6130_v28 = vsel %vm5953_vm6, %v6129_v3, %v6125_v2  ;;  %v5989_v42 = vsel %vm5988_vm11, %v5987_v18, %v5982_v40 }
 0x243   : > { %v6223_v7 = vrot.slane %v8490_v23, %v8400_v21  ;;  %v6135_v12 = vsel %vm5960_vm7, %v6134_v43, %v6130_v28  ;;  %v6001_v23 = vrot.slane %v8284_v9, %v8458_v37  ;;  %vm6282_vm0 = vcmp.lt.s32.totalorder %v8702_v61, 512 }
 0x247   : > { %v5879_v36 = vpop.permute.xlu1 %5878 }
 0x248   : > { %v6208_v59 = vrot.slane %v5879_v36, %v8407_v19  ;;  %v6204_v36 = vsel %vm5946_vm5, %v6203_v29, %v6199_v31  ;;  %v5994_v19 = vrot.slane %v8272_v51, %v8444_v50  ;;  %v6008_v51 = vrot.slane %v8293_v45, %v8453_v49 }
 0x249   : > { %v6144_v45 = vrot.slane %v8486_v39, %v8400_v21 }
 0x24a   : > { %v6209_v62 = vsel %vm5953_vm6, %v6208_v59, %v6204_v36 }
 0x24b   : > { %v6214_v63 = vsel %vm5960_vm7, %v6213_v34, %v6209_v62 }
 0x24c   : > { %v8492_v0 = vpop.permute.xlu1 %5884 }
 0x24d   : > { %v6218_v27 = vrot.slane %v8492_v0, %v8420_v48  ;;  %v6139_v0 = vrot.slane %v8488_v60, %v8420_v48  ;;  %v5996_v60 = vsel %vm5995_vm12, %v5994_v19, %v5989_v42 }
 0x24e   : > { %v6003_v9 = vsel %vm6002_vm13, %v6001_v23, %v5996_v60 }
 0x24f   : > { %v6219_v26 = vsel %vm5967_vm8, %v6218_v27, %v6214_v63  ;;  %v6140_v1 = vsel %vm5967_vm8, %v6139_v0, %v6135_v12 }
 0x250   : > { %v6224_v48 = vsel %vm5974_vm9, %v6223_v7, %v6219_v26  ;;  %v6145_v21 = vsel %vm5974_vm9, %v6144_v45, %v6140_v1 }
 0x252   : > { %v8494_v35 = vpop.permute.xlu0 %5890 }
 0x253   : > { %v6228_v58 = vrot.slane %v8494_v35, %v8435_v15 }
 0x255   : > { %v6229_v54 = vsel %vm5981_vm10, %v6228_v58, %v6224_v48 }
 0x257   : > { %v8496_v41 = vpop.permute.xlu1 %5842 }
 0x258   : > { %v6149_v57 = vrot.slane %v8496_v41, %v8435_v15 }
 0x25c   : > { %v8498_v55 = vpop.permute.xlu0 %5893 }
 0x25d   : > { %v6233_v25 = vrot.slane %v8498_v55, %v8426_v22 }
 0x25f   : > { %v6234_v17 = vsel %vm5988_vm11, %v6233_v25, %v6229_v54 }
 0x262   : > { %v8513_v11 = vpop.permute.xlu1 %5845 }
 0x263   : > { %v6154_v6 = vrot.slane %v8513_v11, %v8426_v22  ;;  %v6010_v22 = vsel %vm6009_vm14, %v6008_v51, %v6003_v9  ;;  %v6150_v11 = vsel %vm5981_vm10, %v6149_v57, %v6145_v21 }
 0x264   : > { %v6017_v38 = vsel %vm6016_vm15, %v6015_v4, %v6010_v22 }
 0x265   : > { %v6155_v5 = vsel %vm5988_vm11, %v6154_v6, %v6150_v11  ;;  %v6255_v52 = vcombine.low %v6017_v38, %v8700_v44 }
 0x267   : > { %v8524_v46 = vpop.permute.xlu0 %5896  ;;  %v6263_v3 = vrot.slane %v6255_v52, %v8701_v53 }
 0x268   : > { %v6238_v35 = vrot.slane %v8524_v46, %v8444_v50 }
 0x26a   : > { %v6239_v31 = vsel %vm5995_vm12, %v6238_v35, %v6234_v17 }
 0x26e   : > { %v8544_v56 = vpop.permute.xlu1 %5848 }
 0x26f   : > { %v6159_v15 = vrot.slane %v8544_v56, %v8444_v50 }
 0x271   : > { %v6160_v59 = vsel %vm5995_vm12, %v6159_v15, %v6155_v5 }
 0x272   : > { %v5900_v10 = vpop.permute.xlu0 %5899 }
 0x273   : > { %v6243_v39 = vrot.slane %v5900_v10, %v8458_v37 }
 0x278   : > { %v5852_v30 = vpop.permute.xlu1 %5851 }
 0x279   : > { %v6164_v55 = vrot.slane %v5852_v30, %v8458_v37 }
 0x27b   : > { %v6165_v16 = vsel %vm6002_vm13, %v6164_v55, %v6160_v59 }
 0x27d   : > { %v5903_v20 = vpop.permute.xlu0 %5902 }
 0x27e   : > { %v6248_v46 = vrot.slane %v5903_v20, %v8453_v49 }
 0x283   : > { %v5855_v32 = vpop.permute.xlu1 %5854 }
 0x284   : > { %v6169_v50 = vrot.slane %v5855_v32, %v8453_v49  ;;  %v6244_v49 = vsel %vm6002_vm13, %v6243_v39, %v6239_v31 }
 0x285   : > { %v6249_v10 = vsel %vm6009_vm14, %v6248_v46, %v6244_v49 }
 0x286   : > { %v6170_v14 = vsel %vm6009_vm14, %v6169_v50, %v6165_v16 }
 0x288   : > { %v5906_v41 = vpop.permute.xlu0 %5905 }
 0x289   : > { %v6253_v37 = vrot.slane %v5906_v41, %v8698_v33 }
 0x28b   : > { %v6254_v13 = vsel %vm6016_vm15, %v6253_v37, %v6249_v10 }
 0x28e   : > { %v5858_v56 = vpop.permute.xlu1 %5857 }
 0x28f   : > { %v6174_v29 = vrot.slane %v5858_v56, %v8698_v33 }
 0x291   : > { %v6175_v24 = vsel %vm6016_vm15, %v6174_v29, %v6170_v14 }
 0x292   : > { %v6256_v36 = vcombine.low %v6175_v24, %v6254_v13 }
 0x294   : > { %v6270_v62 = vrot.slane %v6256_v36, %v8701_v53 }
 0x296   : > { %v6271_v27 = vcombine.low %v6263_v3, %v6270_v62 }
 0x298   : > { %v6278_v34 = vrot.slane %v6271_v27, %v8701_v53 }
 0x29a   : > { %6284 = vst.msk [vmem:[%s134_s10] sm:$0xf] %vm6282_vm0, %v6278_v34 }
 0x29b   : > { %6484 = shalt.err (!%p6481_p7)
}
 0x29c   : > { %s6485_s2 = scalar_lea.hbm %s6300_s25, 64  ;;  %s6489_s5 = scalar_lea.hbm %s8686_s1, 512 }
 0x29d   : > { %p6486_p9 = scmp.ne.s32.totalorder %s6300_s25, %s6485_s2  ;;  %p6490_p12 = scmp.lt.s32.totalorder %s6300_s25, %s8686_s1 }
 0x29e   : > { %p6491_p13 = scmp.lt.s32.totalorder %s6489_s5, %s6485_s2 }
 0x29f   : > { %p6487_p10 = pnand %p6486_p9, %p6629_p3 }
 0x2a0   : > { %p6492_p0 = por %p6491_p13, %p6490_p12 }
 0x2a1   : > { %p6488_p11 = pneg %p6487_p10 }
 0x2a3   : > { %p6493_p1 = pnand %p6492_p0, %p6488_p11 }
 0x2a5   : > { %6496 = shalt.err (!%p6493_p1)
}
 0x2a6   : > { %6396 = dma.vmem_to_hbm [thread:$0]  (%p6629_p3), %s6303_s21, 64, %s6300_s25, %s6286_s26  }
 0x2a7 PF: > { %p6402_p2 = scmp.ge.s32.totalorder %s6563_s13, 2  ;;  %s6314_s18 = sand.u32 1, %s6535_s6  }
 0x2a8   : > { %s6315_s9 = scalar_lea.sflag [#allocation3], %s6314_s18 }
 0x2a9   : > { %p6399_p4 = pnand %p6402_p2, %p6638_p8 }
 0x2ab   : > { %p6400_p5 = pneg %p6399_p4 }
 0x2ad   : > { %6530 = dma.done.wait (%p6400_p5), %s6315_s9, 64  }
 0x2ae   : > { %6532 = vsyncadd (%p6400_p5), %s6315_s9, 4294967232  ;;  %s14_s13 = sadd.s32 1, %s6563_s13   ;;  %s8703_s6 = smov %s6539_s7 }
 0x2af   : > { %p11_p6 = scmp.ge.s32.totalorder %s14_s13, 10   ;;  %s8704_s7 = smov %s6543_s8 }
 0x2b0   : > { %s8705_s8 = smov %s6647_s24  ;;  %s8706_s9 = smov %s6555_s11 }
 0x2b1   : > { %s8707_s10 = smov %s6559_s12  ;;  %s8708_s11 = smov %s8711_s16 }
 0x2b2   : > { %s8709_s12 = smov %s8715_s17  ;;  %13 = sbr.rel (!%p11_p6) target bundleno = 5 (0x5), region = 59 }
 0x2b7   :  { %6320 = vsyncpa [#allocation3], 1 }
 0x2b8   :  { %6322 = vsyncpa [#allocation3 + $0x1], 1 }

</bundles_post_ra>
